<compile_context>
chip_gen: v7x
topology: tpu7x:2x2x1
jax: 0.10.0
libtpu: 0.0.40
codegen_flags: <defaults>
</compile_context>

<pallas_src>
import numpy as np
import jax
import jax.numpy as jnp
from jax.experimental import pallas as pl
from jax.experimental.pallas import tpu as pltpu

# ---- static configuration ---------------------------------------------------
SEQ_LEN = 8            # pmp.batch_size
INPUT_DIM = 16         # inputDim
NUM_FILTER = 4         # num_filter
OUT_FEAT = 6           # SharedLayers outputDim (feature_outputDim)
ACTION_DIM = 4         # inputDim_action
FH1 = 32               # forward_hidden_size1
FH2 = 32               # forward_hidden_size2
OUT_DIM = 8            # ForwardModel outputDim
EPS = 1e-5
LANES = 128

FILTER_SIZES = [int(v) for v in np.arange(1, SEQ_LEN, step=2, dtype=int)]  # [1,3,5,7]
NUM_FILTERS = ([NUM_FILTER]
               + [NUM_FILTER * 2] * int(len(FILTER_SIZES) / 2)
               + [NUM_FILTER] * len(FILTER_SIZES))[: len(FILTER_SIZES)]    # [4,8,8,4]
NUM_FILTER_TOTAL = sum(NUM_FILTERS)                                        # 24
HEAD_IN = ACTION_DIM + OUT_FEAT                                            # 10
CONV_COLS = sum((SEQ_LEN - fs + 1) * fn
                for fs, fn in zip(FILTER_SIZES, NUM_FILTERS))              # 120

assert SEQ_LEN * INPUT_DIM == LANES
assert CONV_COLS <= LANES and 2 * NUM_FILTER_TOTAL <= LANES
assert FH1 <= LANES and FH2 <= LANES and OUT_DIM <= LANES

# ---- packed-vector row indices (vecs: (16, 128) f32) -------------------------
(ROW_BN1_G, ROW_BN1_B, ROW_CONV_B, ROW_CONV_G, ROW_CONV_BETA,
 ROW_HW_B, ROW_COMP_B, ROW_FBN_G, ROW_FBN_B, ROW_FB1, ROW_FB2,
 ROW_FBN2_G, ROW_FBN2_B, ROW_FB3) = range(14)


def _align8(n):
    return ((n + 7) // 8) * 8


NUM_VEC_ROWS = _align8(14)                      # 16

# ---- packed-weight row offsets (wts: (256, 128) f32, 8-row aligned) ----------
R_WBAND = 0
R_WHW = R_WBAND + _align8(LANES)                # 128  (24, 48)
R_WC = R_WHW + _align8(NUM_FILTER_TOTAL)        # 152  (24, 6)
R_W1 = R_WC + _align8(NUM_FILTER_TOTAL)         # 176  (10, 32)
R_W2 = R_W1 + _align8(HEAD_IN)                  # 192  (32, 32)
R_W3 = R_W2 + _align8(FH1)                      # 224  (32, 128)
NUM_WT_ROWS = _align8(R_W3 + FH2)               # 256


# =============================================================================
# Kernel
# =============================================================================
def forward_model_kernel(x_ref, act_ref, vecs_ref, proj_ref, wts_ref, out_ref):
    f32 = jnp.float32
    bf16 = jnp.bfloat16

    x = x_ref[...]                                    # (N, 128) lane-dense
    V = vecs_ref[...]                                 # (16, 128) packed vectors
    P1 = proj_ref[0:LANES, :]                         # seq-channel group-average
    P2 = proj_ref[LANES:2 * LANES, :]                 # conv-channel group-average

    # ---- BatchNorm1d over seq channels (train mode, one-pass var, folded) ---
    cm = jnp.mean(x, axis=0, keepdims=True)           # (1,128) mean over N
    cs = jnp.mean(x * x, axis=0, keepdims=True)
    m1 = jnp.dot(cm, P1, preferred_element_type=f32)  # group mean over (N, D)
    v1 = jnp.maximum(jnp.dot(cs, P1, preferred_element_type=f32) - m1 * m1, 0.0)
    s1 = V[ROW_BN1_G:ROW_BN1_G + 1, :] * jax.lax.rsqrt(v1 + EPS)
    b1 = V[ROW_BN1_B:ROW_BN1_B + 1, :] - m1 * s1
    x_bn = x * s1 + b1                                # (N,128)

    # ---- all conv branches as ONE banded matmul + bias + ReLU ---------------
    wband = wts_ref[R_WBAND:R_WBAND + LANES, :].astype(bf16)
    a = jnp.dot(x_bn.astype(bf16), wband, preferred_element_type=f32)
    a = jnp.maximum(a + V[ROW_CONV_B:ROW_CONV_B + 1, :], 0.0)   # (N,128); 120 real

    # ---- BatchNorm2d per conv channel (train mode, folded) ------------------
    cm2 = jnp.mean(a, axis=0, keepdims=True)
    cs2 = jnp.mean(a * a, axis=0, keepdims=True)
    m2 = jnp.dot(cm2, P2, preferred_element_type=f32)
    v2 = jnp.maximum(jnp.dot(cs2, P2, preferred_element_type=f32) - m2 * m2, 0.0)
    s2 = V[ROW_CONV_G:ROW_CONV_G + 1, :] * jax.lax.rsqrt(v2 + EPS)
    b2 = V[ROW_CONV_BETA:ROW_CONV_BETA + 1, :] - m2 * s2
    y = a * s2 + b2

    # ---- MaxPool over valid conv positions (per branch, position-major cols)
    feats = []
    off = 0
    for fs, fn in zip(FILTER_SIZES, NUM_FILTERS):
        H = SEQ_LEN - fs + 1
        m = y[:, off:off + fn]
        for h in range(1, H):
            m = jnp.maximum(m, y[:, off + h * fn: off + (h + 1) * fn])
        feats.append(m)
        off += H * fn
    cats = jnp.concatenate(feats, axis=1)             # (N, 24)

    # ---- Highway (gate + transform fused into one matmul) -------------------
    nf = NUM_FILTER_TOTAL
    whw = wts_ref[R_WHW:R_WHW + nf, 0:2 * nf].astype(bf16)      # (24, 48)
    gt = jnp.dot(cats.astype(bf16), whw, preferred_element_type=f32)
    gt = gt + V[ROW_HW_B:ROW_HW_B + 1, 0:2 * nf]
    g = jnp.maximum(gt[:, 0:nf], 0.0)
    t = jax.nn.sigmoid(gt[:, nf:2 * nf])
    hw = g * t + (1.0 - t) * cats

    # ---- compress Linear + Sigmoid -> SharedLayers features -----------------
    wc = wts_ref[R_WC:R_WC + nf, 0:OUT_FEAT]                    # (24, 6)
    feat = jax.nn.sigmoid(jnp.dot(hw, wc, preferred_element_type=f32)
                          + V[ROW_COMP_B:ROW_COMP_B + 1, 0:OUT_FEAT])  # (N,6)

    # ======================= ForwardModel head ===============================
    xh = jnp.concatenate([act_ref[...], feat], axis=1)          # (N, 10)
    hm = jnp.mean(xh, axis=0, keepdims=True)
    hv = jnp.maximum(jnp.mean(xh * xh, axis=0, keepdims=True) - hm * hm, 0.0)
    sa = V[ROW_FBN_G:ROW_FBN_G + 1, 0:HEAD_IN] * jax.lax.rsqrt(hv + EPS)
    ba = V[ROW_FBN_B:ROW_FBN_B + 1, 0:HEAD_IN] - hm * sa
    xh_bn = xh * sa + ba

    w1 = wts_ref[R_W1:R_W1 + HEAD_IN, 0:FH1]                    # (10, 32)
    h1 = jnp.maximum(jnp.dot(xh_bn, w1, preferred_element_type=f32)
                     + V[ROW_FB1:ROW_FB1 + 1, 0:FH1], 0.0)

    w2 = wts_ref[R_W2:R_W2 + FH1, 0:FH2]                        # (32, 32)
    h2p = (jnp.dot(h1, w2, preferred_element_type=f32)
           + V[ROW_FB2:ROW_FB2 + 1, 0:FH2])
    m2h = jnp.mean(h2p, axis=0, keepdims=True)
    v2h = jnp.maximum(jnp.mean(h2p * h2p, axis=0, keepdims=True) - m2h * m2h, 0.0)
    sc = V[ROW_FBN2_G:ROW_FBN2_G + 1, 0:FH2] * jax.lax.rsqrt(v2h + EPS)
    sh = V[ROW_FBN2_B:ROW_FBN2_B + 1, 0:FH2] - m2h * sc
    h2 = jnp.maximum(h2p * sc + sh, 0.0)

    w3 = wts_ref[R_W3:R_W3 + FH2, :]                            # (32, 128) zero-padded
    out = jax.nn.sigmoid(jnp.dot(h2, w3, preferred_element_type=f32)
                         + V[ROW_FB3:ROW_FB3 + 1, :])
    out_ref[...] = out.astype(out_ref.dtype)                    # lane-dense store


# =============================================================================
# Wrapper-side parameter packing (runs in XLA, once per call / under jit)
# =============================================================================
def _build_proj():
    """Two constant (128,128) group-average matrices: BN1 (per seq channel) and
    conv BN2 (per conv output channel)."""
    grp = np.arange(LANES) // INPUT_DIM
    P1 = (grp[:, None] == grp[None, :]).astype(np.float32) / INPUT_DIM

    chan = -np.ones(LANES, np.int64)
    inv = np.zeros(LANES, np.float32)
    off, ch0 = 0, 0
    for fs, fn in zip(FILTER_SIZES, NUM_FILTERS):
        H = SEQ_LEN - fs + 1
        for h in range(H):
            for f in range(fn):
                chan[off + h * fn + f] = ch0 + f
                inv[off + h * fn + f] = 1.0 / H
        off += H * fn
        ch0 += fn
    same = (chan[:, None] == chan[None, :]) & (chan[:, None] >= 0)
    P2 = same.astype(np.float32) * inv[None, :]
    return np.concatenate([P1, P2], axis=0)            # (256, 128)


_PROJ = _build_proj()


def _build_wband(params):
    """Assemble all conv branches into one banded (128, 128) weight.
    Column layout per branch is position-major: col = off + h*fn + f."""
    W = jnp.zeros((LANES, LANES), jnp.float32)
    off = 0
    for k, (fs, fn) in enumerate(zip(FILTER_SIZES, NUM_FILTERS)):
        w = params[f'conv{k}_w']                       # (fs, D, fn)
        H = SEQ_LEN - fs + 1
        for h in range(H):
            for i in range(fs):
                W = W.at[(h + i) * INPUT_DIM:(h + i + 1) * INPUT_DIM,
                         off + h * fn: off + (h + 1) * fn].set(w[i])
        off += H * fn
    return W


def _build_wts(params):
    wts = jnp.zeros((NUM_WT_ROWS, LANES), jnp.float32)
    wts = wts.at[R_WBAND:R_WBAND + LANES, :].set(_build_wband(params))
    whw = jnp.concatenate([params['hw_wg'], params['hw_wt']], axis=1)   # (24, 48)
    wts = wts.at[R_WHW:R_WHW + whw.shape[0], :whw.shape[1]].set(whw)
    for r0, name in ((R_WC, 'comp_w'), (R_W1, 'fwd_w1'),
                     (R_W2, 'fwd_w2'), (R_W3, 'fwd_w3')):
        w = params[name]
        wts = wts.at[r0:r0 + w.shape[0], :w.shape[1]].set(w)
    return wts


def _pad_lane(v):
    v = jnp.asarray(v, jnp.float32).reshape(-1)
    return jnp.pad(v, (0, LANES - v.shape[0]))


def _build_vecs(params):
    def conv_expand(suffix):
        segs = []
        for k, (fs, fn) in enumerate(zip(FILTER_SIZES, NUM_FILTERS)):
            H = SEQ_LEN - fs + 1
            segs.append(jnp.tile(params[f'conv{k}_{suffix}'].reshape(-1), H))
        return jnp.concatenate(segs)

    rows = [None] * NUM_VEC_ROWS
    rows[ROW_BN1_G] = jnp.repeat(params['bn1_gamma'].reshape(-1), INPUT_DIM)
    rows[ROW_BN1_B] = jnp.repeat(params['bn1_beta'].reshape(-1), INPUT_DIM)
    rows[ROW_CONV_B] = conv_expand('b')
    rows[ROW_CONV_G] = conv_expand('bn_gamma')
    rows[ROW_CONV_BETA] = conv_expand('bn_beta')
    rows[ROW_HW_B] = jnp.concatenate([params['hw_bg'].reshape(-1),
                                      params['hw_bt'].reshape(-1)])
    rows[ROW_COMP_B] = params['comp_b']
    rows[ROW_FBN_G] = params['fwd_bn_gamma']
    rows[ROW_FBN_B] = params['fwd_bn_beta']
    rows[ROW_FB1] = params['fwd_b1']
    rows[ROW_FB2] = params['fwd_b2']
    rows[ROW_FBN2_G] = params['fwd_bn2_gamma']
    rows[ROW_FBN2_B] = params['fwd_bn2_beta']
    rows[ROW_FB3] = params['fwd_b3']
    rows = [(_pad_lane(r) if r is not None else jnp.zeros((LANES,), jnp.float32))
            for r in rows]
    return jnp.stack(rows, axis=0)                     # (16, 128)


@jax.jit
def forward_model(action, oldstate, params):
    N = oldstate.shape[0]
    x_flat = oldstate.reshape(N, SEQ_LEN * INPUT_DIM).astype(jnp.float32)
    vecs = _build_vecs(params)
    wts = _build_wts(params)
    proj = jnp.asarray(_PROJ)

    # TODO(synk): if N grows beyond toy size (or on v7x with 2 TCs), add a
    # batch grid with dimension_semantics=("parallel",) and a separate
    # batch-norm statistics pass so per-block stats match the reference.
    vmem = pl.BlockSpec(memory_space=pltpu.MemorySpace.VMEM)
    out = pl.pallas_call(
        forward_model_kernel,
        out_shape=jax.ShapeDtypeStruct((N, LANES), jnp.float32),
        in_specs=[vmem] * 5,
        out_specs=vmem,
    )(x_flat, action.astype(jnp.float32), vecs, proj, wts)
    return out[:, :OUT_DIM]


# =============================================================================
# Parameter init (fresh-module style, matching the PyTorch shapes)
# =============================================================================
def init_params(key):
    params = {}
    keys = iter(jax.random.split(key, 32))

    params['bn1_gamma'] = jnp.ones((SEQ_LEN,), jnp.float32)
    params['bn1_beta'] = jnp.zeros((SEQ_LEN,), jnp.float32)
    for k, (fs, fn) in enumerate(zip(FILTER_SIZES, NUM_FILTERS)):
        params[f'conv{k}_w'] = 0.1 * jax.random.normal(
            next(keys), (fs, INPUT_DIM, fn), jnp.float32)
        params[f'conv{k}_b'] = 0.01 * jax.random.normal(next(keys), (fn,), jnp.float32)
        params[f'conv{k}_bn_gamma'] = jnp.ones((fn,), jnp.float32)
        params[f'conv{k}_bn_beta'] = jnp.zeros((fn,), jnp.float32)

    F = NUM_FILTER_TOTAL
    params['hw_wg'] = 0.1 * jax.random.normal(next(keys), (F, F), jnp.float32)
    params['hw_bg'] = 0.01 * jax.random.normal(next(keys), (F,), jnp.float32)
    params['hw_wt'] = 0.1 * jax.random.normal(next(keys), (F, F), jnp.float32)
    params['hw_bt'] = 0.01 * jax.random.normal(next(keys), (F,), jnp.float32)
    params['comp_w'] = 0.1 * jax.random.normal(next(keys), (F, OUT_FEAT), jnp.float32)
    params['comp_b'] = 0.01 * jax.random.normal(next(keys), (OUT_FEAT,), jnp.float32)

    params['fwd_bn_gamma'] = jnp.ones((HEAD_IN,), jnp.float32)
    params['fwd_bn_beta'] = jnp.zeros((HEAD_IN,), jnp.float32)
    params['fwd_w1'] = 0.1 * jax.random.normal(next(keys), (HEAD_IN, FH1), jnp.float32)
    params['fwd_b1'] = 0.01 * jax.random.normal(next(keys), (FH1,), jnp.float32)
    params['fwd_w2'] = 0.1 * jax.random.normal(next(keys), (FH1, FH2), jnp.float32)
    params['fwd_b2'] = 0.01 * jax.random.normal(next(keys), (FH2,), jnp.float32)
    params['fwd_bn2_gamma'] = jnp.ones((FH2,), jnp.float32)
    params['fwd_bn2_beta'] = jnp.zeros((FH2,), jnp.float32)
    params['fwd_w3'] = 0.1 * jax.random.normal(next(keys), (FH2, OUT_DIM), jnp.float32)
    params['fwd_b3'] = 0.01 * jax.random.normal(next(keys), (OUT_DIM,), jnp.float32)
    return params


if __name__ == "__main__":
    key = jax.random.PRNGKey(0)
    kx, ka, kp = jax.random.split(key, 3)

    N = 4
    oldstate = jax.random.normal(kx, (N, SEQ_LEN, INPUT_DIM), jnp.float32)
    action = jax.random.normal(ka, (N, ACTION_DIM), jnp.float32)
    params = init_params(kp)

    out = forward_model(action, oldstate, params)
    out = jax.block_until_ready(out)

    assert out.shape == (N, OUT_DIM), out.shape
    assert bool(jnp.all(jnp.isfinite(out)))
    assert bool(jnp.all((out >= 0.0) & (out <= 1.0)))   # final Sigmoid range
    print("KERNEL_OK")
</pallas_src>

<mosaic_0001>
module attributes {stable_mosaic.version = 11 : i64} {
  func.func @forward_model_kernel(%arg0: memref<4x128xf32, #tpu.memory_space<vmem>>, %arg1: memref<4x4xf32, #tpu.memory_space<vmem>>, %arg2: memref<16x128xf32, #tpu.memory_space<vmem>>, %arg3: memref<256x128xf32, #tpu.memory_space<vmem>>, %arg4: memref<256x128xf32, #tpu.memory_space<vmem>>, %arg5: memref<4x128xf32, #tpu.memory_space<vmem>>) attributes {dimension_semantics = [], scalar_prefetch = 0 : i64, scratch_operands = 0 : i64, tpu.core_type = #tpu.core_type<tc>} {
    %c0 = arith.constant 0 : index
    %c0_0 = arith.constant 0 : index
    %0 = vector.load %arg0[%c0, %c0_0] : memref<4x128xf32, #tpu.memory_space<vmem>>, vector<4x128xf32>
    %c0_1 = arith.constant 0 : index
    %c0_2 = arith.constant 0 : index
    %1 = vector.load %arg2[%c0_1, %c0_2] : memref<16x128xf32, #tpu.memory_space<vmem>>, vector<16x128xf32>
    %c0_3 = arith.constant 0 : index
    %c0_4 = arith.constant 0 : index
    %2 = vector.load %arg3[%c0_3, %c0_4] : memref<256x128xf32, #tpu.memory_space<vmem>>, vector<128x128xf32>
    %c128 = arith.constant 128 : index
    %c0_5 = arith.constant 0 : index
    %3 = vector.load %arg3[%c128, %c0_5] : memref<256x128xf32, #tpu.memory_space<vmem>>, vector<128x128xf32>
    %cst = arith.constant dense<0.000000e+00> : vector<128xf32>
    %4 = vector.multi_reduction <add>, %0, %cst [0] : vector<4x128xf32> to vector<128xf32>
    %5 = vector.shape_cast %4 : vector<128xf32> to vector<1x128xf32>
    %cst_6 = arith.constant 4.000000e+00 : f32
    %6 = vector.broadcast %cst_6 : f32 to vector<1x128xf32>
    %7 = arith.divf %5, %6 : vector<1x128xf32>
    %8 = arith.mulf %0, %0 : vector<4x128xf32>
    %cst_7 = arith.constant dense<0.000000e+00> : vector<128xf32>
    %9 = vector.multi_reduction <add>, %8, %cst_7 [0] : vector<4x128xf32> to vector<128xf32>
    %10 = vector.shape_cast %9 : vector<128xf32> to vector<1x128xf32>
    %cst_8 = arith.constant 4.000000e+00 : f32
    %11 = vector.broadcast %cst_8 : f32 to vector<1x128xf32>
    %12 = arith.divf %10, %11 : vector<1x128xf32>
    %cst_9 = arith.constant dense<0.000000e+00> : vector<1x128xf32>
    %13 = tpu.matmul %7, %2, %cst_9 {dimension_numbers = #tpu.dot_dimension_numbers<[1], [0], [0], [1], [0, 0, 1, 1], [], []>} : vector<1x128xf32>, vector<128x128xf32>, vector<1x128xf32> -> vector<1x128xf32>
    %cst_10 = arith.constant dense<0.000000e+00> : vector<1x128xf32>
    %14 = tpu.matmul %12, %2, %cst_10 {dimension_numbers = #tpu.dot_dimension_numbers<[1], [0], [0], [1], [0, 0, 1, 1], [], []>} : vector<1x128xf32>, vector<128x128xf32>, vector<1x128xf32> -> vector<1x128xf32>
    %15 = arith.mulf %13, %13 : vector<1x128xf32>
    %16 = arith.subf %14, %15 : vector<1x128xf32>
    %cst_11 = arith.constant 0.000000e+00 : f32
    %17 = vector.broadcast %cst_11 : f32 to vector<1x128xf32>
    %18 = arith.maximumf %16, %17 : vector<1x128xf32>
    %19 = vector.extract_strided_slice %1 {offsets = [0, 0], sizes = [1, 128], strides = [1, 1]} : vector<16x128xf32> to vector<1x128xf32>
    %cst_12 = arith.constant 9.99999974E-6 : f32
    %20 = vector.broadcast %cst_12 : f32 to vector<1x128xf32>
    %21 = arith.addf %18, %20 : vector<1x128xf32>
    %22 = math.rsqrt %21 : vector<1x128xf32>
    %23 = arith.mulf %19, %22 : vector<1x128xf32>
    %24 = vector.extract_strided_slice %1 {offsets = [1, 0], sizes = [1, 128], strides = [1, 1]} : vector<16x128xf32> to vector<1x128xf32>
    %25 = arith.mulf %13, %23 : vector<1x128xf32>
    %26 = arith.subf %24, %25 : vector<1x128xf32>
    %27 = vector.broadcast %23 : vector<1x128xf32> to vector<4x128xf32>
    %28 = arith.mulf %0, %27 : vector<4x128xf32>
    %29 = vector.broadcast %26 : vector<1x128xf32> to vector<4x128xf32>
    %30 = arith.addf %28, %29 : vector<4x128xf32>
    %c0_13 = arith.constant 0 : index
    %c0_14 = arith.constant 0 : index
    %31 = vector.load %arg4[%c0_13, %c0_14] : memref<256x128xf32, #tpu.memory_space<vmem>>, vector<128x128xf32>
    %32 = arith.truncf %31 : vector<128x128xf32> to vector<128x128xbf16>
    %33 = arith.truncf %30 : vector<4x128xf32> to vector<4x128xbf16>
    %cst_15 = arith.constant dense<0.000000e+00> : vector<4x128xf32>
    %34 = tpu.matmul %33, %32, %cst_15 {dimension_numbers = #tpu.dot_dimension_numbers<[1], [0], [0], [1], [0, 0, 1, 1], [], []>} : vector<4x128xbf16>, vector<128x128xbf16>, vector<4x128xf32> -> vector<4x128xf32>
    %35 = vector.extract_strided_slice %1 {offsets = [2, 0], sizes = [1, 128], strides = [1, 1]} : vector<16x128xf32> to vector<1x128xf32>
    %36 = vector.broadcast %35 : vector<1x128xf32> to vector<4x128xf32>
    %37 = arith.addf %34, %36 : vector<4x128xf32>
    %cst_16 = arith.constant 0.000000e+00 : f32
    %38 = vector.broadcast %cst_16 : f32 to vector<4x128xf32>
    %39 = arith.maximumf %37, %38 : vector<4x128xf32>
    %cst_17 = arith.constant dense<0.000000e+00> : vector<128xf32>
    %40 = vector.multi_reduction <add>, %39, %cst_17 [0] : vector<4x128xf32> to vector<128xf32>
    %41 = vector.shape_cast %40 : vector<128xf32> to vector<1x128xf32>
    %cst_18 = arith.constant 4.000000e+00 : f32
    %42 = vector.broadcast %cst_18 : f32 to vector<1x128xf32>
    %43 = arith.divf %41, %42 : vector<1x128xf32>
    %44 = arith.mulf %39, %39 : vector<4x128xf32>
    %cst_19 = arith.constant dense<0.000000e+00> : vector<128xf32>
    %45 = vector.multi_reduction <add>, %44, %cst_19 [0] : vector<4x128xf32> to vector<128xf32>
    %46 = vector.shape_cast %45 : vector<128xf32> to vector<1x128xf32>
    %cst_20 = arith.constant 4.000000e+00 : f32
    %47 = vector.broadcast %cst_20 : f32 to vector<1x128xf32>
    %48 = arith.divf %46, %47 : vector<1x128xf32>
    %cst_21 = arith.constant dense<0.000000e+00> : vector<1x128xf32>
    %49 = tpu.matmul %43, %3, %cst_21 {dimension_numbers = #tpu.dot_dimension_numbers<[1], [0], [0], [1], [0, 0, 1, 1], [], []>} : vector<1x128xf32>, vector<128x128xf32>, vector<1x128xf32> -> vector<1x128xf32>
    %cst_22 = arith.constant dense<0.000000e+00> : vector<1x128xf32>
    %50 = tpu.matmul %48, %3, %cst_22 {dimension_numbers = #tpu.dot_dimension_numbers<[1], [0], [0], [1], [0, 0, 1, 1], [], []>} : vector<1x128xf32>, vector<128x128xf32>, vector<1x128xf32> -> vector<1x128xf32>
    %51 = arith.mulf %49, %49 : vector<1x128xf32>
    %52 = arith.subf %50, %51 : vector<1x128xf32>
    %cst_23 = arith.constant 0.000000e+00 : f32
    %53 = vector.broadcast %cst_23 : f32 to vector<1x128xf32>
    %54 = arith.maximumf %52, %53 : vector<1x128xf32>
    %55 = vector.extract_strided_slice %1 {offsets = [3, 0], sizes = [1, 128], strides = [1, 1]} : vector<16x128xf32> to vector<1x128xf32>
    %cst_24 = arith.constant 9.99999974E-6 : f32
    %56 = vector.broadcast %cst_24 : f32 to vector<1x128xf32>
    %57 = arith.addf %54, %56 : vector<1x128xf32>
    %58 = math.rsqrt %57 : vector<1x128xf32>
    %59 = arith.mulf %55, %58 : vector<1x128xf32>
    %60 = vector.extract_strided_slice %1 {offsets = [4, 0], sizes = [1, 128], strides = [1, 1]} : vector<16x128xf32> to vector<1x128xf32>
    %61 = arith.mulf %49, %59 : vector<1x128xf32>
    %62 = arith.subf %60, %61 : vector<1x128xf32>
    %63 = vector.broadcast %59 : vector<1x128xf32> to vector<4x128xf32>
    %64 = arith.mulf %39, %63 : vector<4x128xf32>
    %65 = vector.broadcast %62 : vector<1x128xf32> to vector<4x128xf32>
    %66 = arith.addf %64, %65 : vector<4x128xf32>
    %67 = vector.extract_strided_slice %66 {offsets = [0, 0], sizes = [4, 4], strides = [1, 1]} : vector<4x128xf32> to vector<4x4xf32>
    %68 = vector.extract_strided_slice %66 {offsets = [0, 4], sizes = [4, 4], strides = [1, 1]} : vector<4x128xf32> to vector<4x4xf32>
    %69 = arith.maximumf %67, %68 : vector<4x4xf32>
    %70 = vector.extract_strided_slice %66 {offsets = [0, 8], sizes = [4, 4], strides = [1, 1]} : vector<4x128xf32> to vector<4x4xf32>
    %71 = arith.maximumf %69, %70 : vector<4x4xf32>
    %72 = vector.extract_strided_slice %66 {offsets = [0, 12], sizes = [4, 4], strides = [1, 1]} : vector<4x128xf32> to vector<4x4xf32>
    %73 = arith.maximumf %71, %72 : vector<4x4xf32>
    %74 = vector.extract_strided_slice %66 {offsets = [0, 16], sizes = [4, 4], strides = [1, 1]} : vector<4x128xf32> to vector<4x4xf32>
    %75 = arith.maximumf %73, %74 : vector<4x4xf32>
    %76 = vector.extract_strided_slice %66 {offsets = [0, 20], sizes = [4, 4], strides = [1, 1]} : vector<4x128xf32> to vector<4x4xf32>
    %77 = arith.maximumf %75, %76 : vector<4x4xf32>
    %78 = vector.extract_strided_slice %66 {offsets = [0, 24], sizes = [4, 4], strides = [1, 1]} : vector<4x128xf32> to vector<4x4xf32>
    %79 = arith.maximumf %77, %78 : vector<4x4xf32>
    %80 = vector.extract_strided_slice %66 {offsets = [0, 28], sizes = [4, 4], strides = [1, 1]} : vector<4x128xf32> to vector<4x4xf32>
    %81 = arith.maximumf %79, %80 : vector<4x4xf32>
    %82 = vector.extract_strided_slice %66 {offsets = [0, 32], sizes = [4, 8], strides = [1, 1]} : vector<4x128xf32> to vector<4x8xf32>
    %83 = vector.extract_strided_slice %66 {offsets = [0, 40], sizes = [4, 8], strides = [1, 1]} : vector<4x128xf32> to vector<4x8xf32>
    %84 = arith.maximumf %82, %83 : vector<4x8xf32>
    %85 = vector.extract_strided_slice %66 {offsets = [0, 48], sizes = [4, 8], strides = [1, 1]} : vector<4x128xf32> to vector<4x8xf32>
    %86 = arith.maximumf %84, %85 : vector<4x8xf32>
    %87 = vector.extract_strided_slice %66 {offsets = [0, 56], sizes = [4, 8], strides = [1, 1]} : vector<4x128xf32> to vector<4x8xf32>
    %88 = arith.maximumf %86, %87 : vector<4x8xf32>
    %89 = vector.extract_strided_slice %66 {offsets = [0, 64], sizes = [4, 8], strides = [1, 1]} : vector<4x128xf32> to vector<4x8xf32>
    %90 = arith.maximumf %88, %89 : vector<4x8xf32>
    %91 = vector.extract_strided_slice %66 {offsets = [0, 72], sizes = [4, 8], strides = [1, 1]} : vector<4x128xf32> to vector<4x8xf32>
    %92 = arith.maximumf %90, %91 : vector<4x8xf32>
    %93 = vector.extract_strided_slice %66 {offsets = [0, 80], sizes = [4, 8], strides = [1, 1]} : vector<4x128xf32> to vector<4x8xf32>
    %94 = vector.extract_strided_slice %66 {offsets = [0, 88], sizes = [4, 8], strides = [1, 1]} : vector<4x128xf32> to vector<4x8xf32>
    %95 = arith.maximumf %93, %94 : vector<4x8xf32>
    %96 = vector.extract_strided_slice %66 {offsets = [0, 96], sizes = [4, 8], strides = [1, 1]} : vector<4x128xf32> to vector<4x8xf32>
    %97 = arith.maximumf %95, %96 : vector<4x8xf32>
    %98 = vector.extract_strided_slice %66 {offsets = [0, 104], sizes = [4, 8], strides = [1, 1]} : vector<4x128xf32> to vector<4x8xf32>
    %99 = arith.maximumf %97, %98 : vector<4x8xf32>
    %100 = vector.extract_strided_slice %66 {offsets = [0, 112], sizes = [4, 4], strides = [1, 1]} : vector<4x128xf32> to vector<4x4xf32>
    %101 = vector.extract_strided_slice %66 {offsets = [0, 116], sizes = [4, 4], strides = [1, 1]} : vector<4x128xf32> to vector<4x4xf32>
    %102 = arith.maximumf %100, %101 : vector<4x4xf32>
    %103 = tpu.concatenate %81, %92, %99, %102 in 1 : vector<4x4xf32>, vector<4x8xf32>, vector<4x8xf32>, vector<4x4xf32> -> vector<4x24xf32>
    %c128_25 = arith.constant 128 : index
    %c0_26 = arith.constant 0 : index
    %104 = vector.load %arg4[%c128_25, %c0_26] : memref<256x128xf32, #tpu.memory_space<vmem>>, vector<24x48xf32>
    %105 = arith.truncf %104 : vector<24x48xf32> to vector<24x48xbf16>
    %106 = arith.truncf %103 : vector<4x24xf32> to vector<4x24xbf16>
    %cst_27 = arith.constant dense<0.000000e+00> : vector<4x48xf32>
    %107 = tpu.matmul %106, %105, %cst_27 {dimension_numbers = #tpu.dot_dimension_numbers<[1], [0], [0], [1], [0, 0, 1, 1], [], []>} : vector<4x24xbf16>, vector<24x48xbf16>, vector<4x48xf32> -> vector<4x48xf32>
    %108 = vector.extract_strided_slice %1 {offsets = [5, 0], sizes = [1, 48], strides = [1, 1]} : vector<16x128xf32> to vector<1x48xf32>
    %109 = vector.broadcast %108 : vector<1x48xf32> to vector<4x48xf32>
    %110 = arith.addf %107, %109 : vector<4x48xf32>
    %111 = vector.extract_strided_slice %110 {offsets = [0, 0], sizes = [4, 24], strides = [1, 1]} : vector<4x48xf32> to vector<4x24xf32>
    %cst_28 = arith.constant 0.000000e+00 : f32
    %112 = vector.broadcast %cst_28 : f32 to vector<4x24xf32>
    %113 = arith.maximumf %111, %112 : vector<4x24xf32>
    %114 = vector.extract_strided_slice %110 {offsets = [0, 24], sizes = [4, 24], strides = [1, 1]} : vector<4x48xf32> to vector<4x24xf32>
    %115 = arith.negf %114 : vector<4x24xf32>
    %116 = math.exp %115 : vector<4x24xf32>
    %cst_29 = arith.constant 1.000000e+00 : f32
    %117 = vector.broadcast %cst_29 : f32 to vector<4x24xf32>
    %118 = arith.addf %117, %116 : vector<4x24xf32>
    %119 = arith.divf %117, %118 : vector<4x24xf32>
    %120 = arith.mulf %113, %119 : vector<4x24xf32>
    %cst_30 = arith.constant 1.000000e+00 : f32
    %121 = vector.broadcast %cst_30 : f32 to vector<4x24xf32>
    %122 = arith.subf %121, %119 : vector<4x24xf32>
    %123 = arith.mulf %122, %103 : vector<4x24xf32>
    %124 = arith.addf %120, %123 : vector<4x24xf32>
    %c152 = arith.constant 152 : index
    %c0_31 = arith.constant 0 : index
    %125 = vector.load %arg4[%c152, %c0_31] : memref<256x128xf32, #tpu.memory_space<vmem>>, vector<24x6xf32>
    %cst_32 = arith.constant dense<0.000000e+00> : vector<4x6xf32>
    %126 = tpu.matmul %124, %125, %cst_32 {dimension_numbers = #tpu.dot_dimension_numbers<[1], [0], [0], [1], [0, 0, 1, 1], [], []>} : vector<4x24xf32>, vector<24x6xf32>, vector<4x6xf32> -> vector<4x6xf32>
    %127 = vector.extract_strided_slice %1 {offsets = [6, 0], sizes = [1, 6], strides = [1, 1]} : vector<16x128xf32> to vector<1x6xf32>
    %128 = vector.broadcast %127 : vector<1x6xf32> to vector<4x6xf32>
    %129 = arith.addf %126, %128 : vector<4x6xf32>
    %130 = arith.negf %129 : vector<4x6xf32>
    %131 = math.exp %130 : vector<4x6xf32>
    %cst_33 = arith.constant 1.000000e+00 : f32
    %132 = vector.broadcast %cst_33 : f32 to vector<4x6xf32>
    %133 = arith.addf %132, %131 : vector<4x6xf32>
    %134 = arith.divf %132, %133 : vector<4x6xf32>
    %c0_34 = arith.constant 0 : index
    %c0_35 = arith.constant 0 : index
    %135 = vector.load %arg1[%c0_34, %c0_35] : memref<4x4xf32, #tpu.memory_space<vmem>>, vector<4x4xf32>
    %136 = tpu.concatenate %135, %134 in 1 : vector<4x4xf32>, vector<4x6xf32> -> vector<4x10xf32>
    %cst_36 = arith.constant dense<0.000000e+00> : vector<10xf32>
    %137 = vector.multi_reduction <add>, %136, %cst_36 [0] : vector<4x10xf32> to vector<10xf32>
    %138 = vector.shape_cast %137 : vector<10xf32> to vector<1x10xf32>
    %cst_37 = arith.constant 4.000000e+00 : f32
    %139 = vector.broadcast %cst_37 : f32 to vector<1x10xf32>
    %140 = arith.divf %138, %139 : vector<1x10xf32>
    %141 = arith.mulf %136, %136 : vector<4x10xf32>
    %cst_38 = arith.constant dense<0.000000e+00> : vector<10xf32>
    %142 = vector.multi_reduction <add>, %141, %cst_38 [0] : vector<4x10xf32> to vector<10xf32>
    %143 = vector.shape_cast %142 : vector<10xf32> to vector<1x10xf32>
    %cst_39 = arith.constant 4.000000e+00 : f32
    %144 = vector.broadcast %cst_39 : f32 to vector<1x10xf32>
    %145 = arith.divf %143, %144 : vector<1x10xf32>
    %146 = arith.mulf %140, %140 : vector<1x10xf32>
    %147 = arith.subf %145, %146 : vector<1x10xf32>
    %cst_40 = arith.constant 0.000000e+00 : f32
    %148 = vector.broadcast %cst_40 : f32 to vector<1x10xf32>
    %149 = arith.maximumf %147, %148 : vector<1x10xf32>
    %150 = vector.extract_strided_slice %1 {offsets = [7, 0], sizes = [1, 10], strides = [1, 1]} : vector<16x128xf32> to vector<1x10xf32>
    %cst_41 = arith.constant 9.99999974E-6 : f32
    %151 = vector.broadcast %cst_41 : f32 to vector<1x10xf32>
    %152 = arith.addf %149, %151 : vector<1x10xf32>
    %153 = math.rsqrt %152 : vector<1x10xf32>
    %154 = arith.mulf %150, %153 : vector<1x10xf32>
    %155 = vector.extract_strided_slice %1 {offsets = [8, 0], sizes = [1, 10], strides = [1, 1]} : vector<16x128xf32> to vector<1x10xf32>
    %156 = arith.mulf %140, %154 : vector<1x10xf32>
    %157 = arith.subf %155, %156 : vector<1x10xf32>
    %158 = vector.broadcast %154 : vector<1x10xf32> to vector<4x10xf32>
    %159 = arith.mulf %136, %158 : vector<4x10xf32>
    %160 = vector.broadcast %157 : vector<1x10xf32> to vector<4x10xf32>
    %161 = arith.addf %159, %160 : vector<4x10xf32>
    %c176 = arith.constant 176 : index
    %c0_42 = arith.constant 0 : index
    %162 = vector.load %arg4[%c176, %c0_42] : memref<256x128xf32, #tpu.memory_space<vmem>>, vector<10x32xf32>
    %cst_43 = arith.constant dense<0.000000e+00> : vector<4x32xf32>
    %163 = tpu.matmul %161, %162, %cst_43 {dimension_numbers = #tpu.dot_dimension_numbers<[1], [0], [0], [1], [0, 0, 1, 1], [], []>} : vector<4x10xf32>, vector<10x32xf32>, vector<4x32xf32> -> vector<4x32xf32>
    %164 = vector.extract_strided_slice %1 {offsets = [9, 0], sizes = [1, 32], strides = [1, 1]} : vector<16x128xf32> to vector<1x32xf32>
    %165 = vector.broadcast %164 : vector<1x32xf32> to vector<4x32xf32>
    %166 = arith.addf %163, %165 : vector<4x32xf32>
    %cst_44 = arith.constant 0.000000e+00 : f32
    %167 = vector.broadcast %cst_44 : f32 to vector<4x32xf32>
    %168 = arith.maximumf %166, %167 : vector<4x32xf32>
    %c192 = arith.constant 192 : index
    %c0_45 = arith.constant 0 : index
    %169 = vector.load %arg4[%c192, %c0_45] : memref<256x128xf32, #tpu.memory_space<vmem>>, vector<32x32xf32>
    %cst_46 = arith.constant dense<0.000000e+00> : vector<4x32xf32>
    %170 = tpu.matmul %168, %169, %cst_46 {dimension_numbers = #tpu.dot_dimension_numbers<[1], [0], [0], [1], [0, 0, 1, 1], [], []>} : vector<4x32xf32>, vector<32x32xf32>, vector<4x32xf32> -> vector<4x32xf32>
    %171 = vector.extract_strided_slice %1 {offsets = [10, 0], sizes = [1, 32], strides = [1, 1]} : vector<16x128xf32> to vector<1x32xf32>
    %172 = vector.broadcast %171 : vector<1x32xf32> to vector<4x32xf32>
    %173 = arith.addf %170, %172 : vector<4x32xf32>
    %cst_47 = arith.constant dense<0.000000e+00> : vector<32xf32>
    %174 = vector.multi_reduction <add>, %173, %cst_47 [0] : vector<4x32xf32> to vector<32xf32>
    %175 = vector.shape_cast %174 : vector<32xf32> to vector<1x32xf32>
    %cst_48 = arith.constant 4.000000e+00 : f32
    %176 = vector.broadcast %cst_48 : f32 to vector<1x32xf32>
    %177 = arith.divf %175, %176 : vector<1x32xf32>
    %178 = arith.mulf %173, %173 : vector<4x32xf32>
    %cst_49 = arith.constant dense<0.000000e+00> : vector<32xf32>
    %179 = vector.multi_reduction <add>, %178, %cst_49 [0] : vector<4x32xf32> to vector<32xf32>
    %180 = vector.shape_cast %179 : vector<32xf32> to vector<1x32xf32>
    %cst_50 = arith.constant 4.000000e+00 : f32
    %181 = vector.broadcast %cst_50 : f32 to vector<1x32xf32>
    %182 = arith.divf %180, %181 : vector<1x32xf32>
    %183 = arith.mulf %177, %177 : vector<1x32xf32>
    %184 = arith.subf %182, %183 : vector<1x32xf32>
    %cst_51 = arith.constant 0.000000e+00 : f32
    %185 = vector.broadcast %cst_51 : f32 to vector<1x32xf32>
    %186 = arith.maximumf %184, %185 : vector<1x32xf32>
    %187 = vector.extract_strided_slice %1 {offsets = [11, 0], sizes = [1, 32], strides = [1, 1]} : vector<16x128xf32> to vector<1x32xf32>
    %cst_52 = arith.constant 9.99999974E-6 : f32
    %188 = vector.broadcast %cst_52 : f32 to vector<1x32xf32>
    %189 = arith.addf %186, %188 : vector<1x32xf32>
    %190 = math.rsqrt %189 : vector<1x32xf32>
    %191 = arith.mulf %187, %190 : vector<1x32xf32>
    %192 = vector.extract_strided_slice %1 {offsets = [12, 0], sizes = [1, 32], strides = [1, 1]} : vector<16x128xf32> to vector<1x32xf32>
    %193 = arith.mulf %177, %191 : vector<1x32xf32>
    %194 = arith.subf %192, %193 : vector<1x32xf32>
    %195 = vector.broadcast %191 : vector<1x32xf32> to vector<4x32xf32>
    %196 = arith.mulf %173, %195 : vector<4x32xf32>
    %197 = vector.broadcast %194 : vector<1x32xf32> to vector<4x32xf32>
    %198 = arith.addf %196, %197 : vector<4x32xf32>
    %cst_53 = arith.constant 0.000000e+00 : f32
    %199 = vector.broadcast %cst_53 : f32 to vector<4x32xf32>
    %200 = arith.maximumf %198, %199 : vector<4x32xf32>
    %c224 = arith.constant 224 : index
    %c0_54 = arith.constant 0 : index
    %201 = vector.load %arg4[%c224, %c0_54] : memref<256x128xf32, #tpu.memory_space<vmem>>, vector<32x128xf32>
    %cst_55 = arith.constant dense<0.000000e+00> : vector<4x128xf32>
    %202 = tpu.matmul %200, %201, %cst_55 {dimension_numbers = #tpu.dot_dimension_numbers<[1], [0], [0], [1], [0, 0, 1, 1], [], []>} : vector<4x32xf32>, vector<32x128xf32>, vector<4x128xf32> -> vector<4x128xf32>
    %203 = vector.extract_strided_slice %1 {offsets = [13, 0], sizes = [1, 128], strides = [1, 1]} : vector<16x128xf32> to vector<1x128xf32>
    %204 = vector.broadcast %203 : vector<1x128xf32> to vector<4x128xf32>
    %205 = arith.addf %202, %204 : vector<4x128xf32>
    %206 = arith.negf %205 : vector<4x128xf32>
    %207 = math.exp %206 : vector<4x128xf32>
    %cst_56 = arith.constant 1.000000e+00 : f32
    %208 = vector.broadcast %cst_56 : f32 to vector<4x128xf32>
    %209 = arith.addf %208, %207 : vector<4x128xf32>
    %210 = arith.divf %208, %209 : vector<4x128xf32>
    %c0_57 = arith.constant 0 : index
    %c0_58 = arith.constant 0 : index
    %211 = vector.load %arg5[%c0_57, %c0_58] : memref<4x128xf32, #tpu.memory_space<vmem>>, vector<4x128xf32>
    tpu.vector_store %arg5[%c0_57, %c0_58], %210 {strides = array<i32>} : memref<4x128xf32, #tpu.memory_space<vmem>>, vector<4x128xf32>,
    return
  }
}

</mosaic_0001>

<bundles_post_ra>
// kernel: tile.103
= control target key start
LH: loop header
LB: loop body
LE: loop exit
PB: predicated region body
PF: predicated region fallthrough
CT: control target
= control target key end

     0   :  { %s22_s0 = inlined_call_operand.vmem [shape: f32[4], index: 0, kind: input, shape index: {}]   ;;  %s23_s1 = inlined_call_operand.vmem [shape: f32[8,4], index: 1, kind: output, shape index: {}]  }
   0x1   :  { %v4_v0 = vld [vmem:[%s22_s0] ss:$0 sm:$0xff] }
   0x2   :  { %5 = vst [vmem:[%s23_s1] sm:$0xff] %v4_v0 }

// kernel: tile.104
= control target key start
LH: loop header
LB: loop body
LE: loop exit
PB: predicated region body
PF: predicated region fallthrough
CT: control target
= control target key end

     0   :  { %s67_s10 = smov 28   ;;  %s68_s11 = smov 20   ;;  %vm3_vm0 = vcmask 31744   ;;  %vm9_vm1 = vcmask 261344   ;;  %vm15_vm2 = vcmask 228544   ;;  %vm21_vm3 = vcmask 195744   ;;  %s111_s0 = inlined_call_operand.vmem [shape: f32[8,4], index: 0, kind: input, shape index: {}]   ;;  %s112_s1 = inlined_call_operand.vmem [shape: f32[32], index: 1, kind: output, shape index: {}]  }
   0x1   :  { %v53_v0 = vld [vmem:[%s111_s0 + $0x7] sm:$0x1]   ;;  %v55_v1 = vld [vmem:[%s111_s0 + $0x5] sm:$0x1]   ;;  %v54_v2 = vld [vmem:[%s111_s0 + $0x6] sm:$0x1]  }
   0x2   :  { %7 = vrot.lane.b32.xlu0 %v53_v0, %s67_s10  ;;  %19 = vrot.lane.b32.xlu1 %v55_v1, %s68_s11  ;;  %v56_v3 = vld [vmem:[%s111_s0 + $0x4] sm:$0x1]   ;;  %v2_v4 = vld [vmem:[%s111_s0] sm:$0x1]   ;;  %s69_s18 = smov 24   ;;  %s70_s19 = smov 16  }
   0x3   :  { %4 = vst.msk [vmem:[#allocation0] sm:$0x1] %vm3_vm0, %v2_v4   ;;  %v57_v5 = vld [vmem:[%s111_s0 + $0x3] sm:$0x1]   ;;  %v58_v6 = vld [vmem:[%s111_s0 + $0x2] sm:$0x1]  }
   0x4   :  { %s71_s24 = smov 12   ;;  %s72_s25 = smov 8   ;;  %v59_v7 = vld [vmem:[%s111_s0 + $0x1] sm:$0x1]   ;;  %vm27_vm4 = vcmask 162944   ;;  %vm33_vm5 = vcmask 130144  }
   0x5   :  { %s73_s0 = smov 4   ;;  %vm39_vm6 = vcmask 97344   ;;  %vm45_vm7 = vcmask 64544  }
   0x6   :  { %13 = vrot.lane.b32.xlu0 %v54_v2, %s69_s18  ;;  %25 = vrot.lane.b32.xlu1 %v56_v3, %s70_s19 }
   0xa   :  { %31 = vrot.lane.b32.xlu0 %v57_v5, %s71_s24  ;;  %37 = vrot.lane.b32.xlu1 %v58_v6, %s72_s25 }
   0xe   :  { %43 = vrot.lane.b32.xlu0 %v59_v7, %s73_s0 }
  0x74   :  { %v8_v8 = vpop.permute.xlu0 %7   ;;  %v20_v9 = vpop.permute.xlu1 %19  }
  0x75   :  { %10 = vst.msk [vmem:[#allocation0] sm:$0x1] %vm9_vm1, %v8_v8  }
  0x78   :  { %v14_v10 = vpop.permute.xlu0 %13   ;;  %v26_v11 = vpop.permute.xlu1 %25  }
  0x79   :  { %16 = vst.msk [vmem:[#allocation0] sm:$0x1] %vm15_vm2, %v14_v10  }
  0x7a   :  { %22 = vst.msk [vmem:[#allocation0] sm:$0x1] %vm21_vm3, %v20_v9  }
  0x7b   :  { %28 = vst.msk [vmem:[#allocation0] sm:$0x1] %vm27_vm4, %v26_v11  }
  0x7c   :  { %v32_v12 = vpop.permute.xlu0 %31   ;;  %v38_v13 = vpop.permute.xlu1 %37  }
  0x7d   :  { %34 = vst.msk [vmem:[#allocation0] sm:$0x1] %vm33_vm5, %v32_v12  }
  0x7e   :  { %40 = vst.msk [vmem:[#allocation0] sm:$0x1] %vm39_vm6, %v38_v13  }
  0x80   :  { %v44_v14 = vpop.permute.xlu0 %43  }
  0x81   :  { %46 = vst.msk [vmem:[#allocation0] sm:$0x1] %vm45_vm7, %v44_v14  }
  0x88   :  { %v50_v15 = vld [vmem:[#allocation0] sm:$0x1] }
  0x89   :  { %52 = vst [vmem:[%s112_s1] sm:$0x1] %v50_v15 }

// kernel: tile.108
= control target key start
LH: loop header
LB: loop body
LE: loop exit
PB: predicated region body
PF: predicated region fallthrough
CT: control target
= control target key end

     0   :  { %s22_s0 = inlined_call_operand.vmem [shape: f32[8], index: 0, kind: input, shape index: {}]   ;;  %s23_s1 = inlined_call_operand.vmem [shape: f32[6,8], index: 1, kind: output, shape index: {}]  }
   0x1   :  { %v4_v0 = vld [vmem:[%s22_s0] ss:$0 sm:$0xff] }
   0x2   :  { %5 = vst [vmem:[%s23_s1] sm:$0xff] %v4_v0 }

// kernel: tile.109
= control target key start
LH: loop header
LB: loop body
LE: loop exit
PB: predicated region body
PF: predicated region fallthrough
CT: control target
= control target key end

     0   :  { %s51_s10 = smov 40   ;;  %s52_s11 = smov 24   ;;  %vm3_vm0 = vcmask 64512   ;;  %vm9_vm1 = vcmask 392512   ;;  %vm15_vm2 = vcmask 326912   ;;  %vm21_vm3 = vcmask 261312   ;;  %s87_s0 = inlined_call_operand.vmem [shape: f32[6,8], index: 0, kind: input, shape index: {}]   ;;  %s88_s1 = inlined_call_operand.vmem [shape: f32[48], index: 1, kind: output, shape index: {}]  }
   0x1   :  { %v41_v0 = vld [vmem:[%s87_s0 + $0x5] sm:$0x1]   ;;  %v43_v1 = vld [vmem:[%s87_s0 + $0x3] sm:$0x1]   ;;  %v42_v2 = vld [vmem:[%s87_s0 + $0x4] sm:$0x1]  }
   0x2   :  { %7 = vrot.lane.b32.xlu0 %v41_v0, %s51_s10  ;;  %19 = vrot.lane.b32.xlu1 %v43_v1, %s52_s11  ;;  %v44_v3 = vld [vmem:[%s87_s0 + $0x2] sm:$0x1]   ;;  %v2_v4 = vld [vmem:[%s87_s0] sm:$0x1]   ;;  %s53_s18 = smov 32   ;;  %s54_s19 = smov 16  }
   0x3   :  { %4 = vst.msk [vmem:[#allocation0] sm:$0x1] %vm3_vm0, %v2_v4   ;;  %v45_v5 = vld [vmem:[%s87_s0 + $0x1] sm:$0x1]   ;;  %s55_s0 = smov 8   ;;  %vm27_vm4 = vcmask 195712  }
   0x4   :  { %vm33_vm5 = vcmask 130112  }
   0x6   :  { %13 = vrot.lane.b32.xlu0 %v42_v2, %s53_s18  ;;  %25 = vrot.lane.b32.xlu1 %v44_v3, %s54_s19 }
   0xa   :  { %31 = vrot.lane.b32.xlu0 %v45_v5, %s55_s0 }
  0x74   :  { %v8_v6 = vpop.permute.xlu0 %7   ;;  %v20_v7 = vpop.permute.xlu1 %19  }
  0x75   :  { %10 = vst.msk [vmem:[#allocation0] sm:$0x1] %vm9_vm1, %v8_v6  }
  0x78   :  { %v14_v8 = vpop.permute.xlu0 %13   ;;  %v26_v9 = vpop.permute.xlu1 %25  }
  0x79   :  { %16 = vst.msk [vmem:[#allocation0] sm:$0x1] %vm15_vm2, %v14_v8  }
  0x7a   :  { %22 = vst.msk [vmem:[#allocation0] sm:$0x1] %vm21_vm3, %v20_v7  }
  0x7b   :  { %28 = vst.msk [vmem:[#allocation0] sm:$0x1] %vm27_vm4, %v26_v9  }
  0x7c   :  { %v32_v10 = vpop.permute.xlu0 %31  }
  0x7d   :  { %34 = vst.msk [vmem:[#allocation0] sm:$0x1] %vm33_vm5, %v32_v10  }
  0x84   :  { %v38_v11 = vld [vmem:[#allocation0] sm:$0x1] }
  0x85   :  { %40 = vst [vmem:[%s88_s1] sm:$0x1] %v38_v11 }

// kernel: tile.113
= control target key start
LH: loop header
LB: loop body
LE: loop exit
PB: predicated region body
PF: predicated region fallthrough
CT: control target
= control target key end

     0   :  { %s22_s0 = inlined_call_operand.vmem [shape: f32[8], index: 0, kind: input, shape index: {}]   ;;  %s23_s1 = inlined_call_operand.vmem [shape: f32[4,8], index: 1, kind: output, shape index: {}]  }
   0x1   :  { %v4_v0 = vld [vmem:[%s22_s0] ss:$0 sm:$0xff] }
   0x2   :  { %5 = vst [vmem:[%s23_s1] sm:$0xf] %v4_v0 }

// kernel: tile.114
= control target key start
LH: loop header
LB: loop body
LE: loop exit
PB: predicated region body
PF: predicated region fallthrough
CT: control target
= control target key end

     0   :  { %vm7_vm0 = vcmask 64512   ;;  %s37_s8 = smov 8   ;;  %s38_s9 = smov 16   ;;  %vm13_vm1 = vcmask 261312   ;;  %vm19_vm2 = vcmask 195712   ;;  %vm25_vm3 = vcmask 130112   ;;  %s55_s0 = inlined_call_operand.vmem [shape: f32[4,8], index: 0, kind: input, shape index: {}]   ;;  %s56_s1 = inlined_call_operand.vmem [shape: f32[32], index: 1, kind: output, shape index: {}]  }
   0x1   :  { %v4_v0 = vld [vmem:[%s55_s0] sm:$0xf]  ;;  %s36_s0 = smov 24  }
   0x2   :  { %5 = vst [vmem:[#allocation1] sm:$0xf] %v4_v0 }
   0x9   :  { %v10_v1 = vld [vmem:[#allocation1 + $0x3] sm:$0x1]   ;;  %v22_v2 = vld [vmem:[#allocation1 + $0x1] sm:$0x1]   ;;  %v6_v3 = vld [vmem:[#allocation1] sm:$0x1]  }
   0xa   :  { %11 = vrot.lane.b32.xlu0 %v10_v1, %s36_s0  ;;  %23 = vrot.lane.b32.xlu1 %v22_v2, %s37_s8  ;;  %v16_v4 = vld [vmem:[#allocation1 + $0x2] sm:$0x1]   ;;  %8 = vst.msk [vmem:[#allocation0] sm:$0x1] %vm7_vm0, %v6_v3  }
   0xe   :  { %17 = vrot.lane.b32.xlu0 %v16_v4, %s38_s9 }
  0x7c   :  { %v12_v5 = vpop.permute.xlu0 %11   ;;  %v24_v6 = vpop.permute.xlu1 %23  }
  0x7d   :  { %14 = vst.msk [vmem:[#allocation0] sm:$0x1] %vm13_vm1, %v12_v5  }
  0x80   :  { %v18_v7 = vpop.permute.xlu0 %17  }
  0x81   :  { %20 = vst.msk [vmem:[#allocation0] sm:$0x1] %vm19_vm2, %v18_v7  }
  0x82   :  { %26 = vst.msk [vmem:[#allocation0] sm:$0x1] %vm25_vm3, %v24_v6  }
  0x89   :  { %v30_v8 = vld [vmem:[#allocation0] sm:$0x1] }
  0x8a   :  { %32 = vst [vmem:[%s56_s1] sm:$0x1] %v30_v8 }

// kernel: tile.118
= control target key start
LH: loop header
LB: loop body
LE: loop exit
PB: predicated region body
PF: predicated region fallthrough
CT: control target
= control target key end

     0   :  { %s22_s0 = inlined_call_operand.vmem [shape: f32[4], index: 0, kind: input, shape index: {}]   ;;  %s23_s1 = inlined_call_operand.vmem [shape: f32[2,4], index: 1, kind: output, shape index: {}]  }
   0x1   :  { %v4_v0 = vld [vmem:[%s22_s0] ss:$0 sm:$0xff] }
   0x2   :  { %5 = vst [vmem:[%s23_s1] sm:$0x3] %v4_v0 }

// kernel: tile.119
= control target key start
LH: loop header
LB: loop body
LE: loop exit
PB: predicated region body
PF: predicated region fallthrough
CT: control target
= control target key end

     0   :  { %vm7_vm0 = vcmask 31744   ;;  %vm13_vm1 = vcmask 64544   ;;  %s39_s0 = inlined_call_operand.vmem [shape: f32[2,4], index: 0, kind: input, shape index: {}]   ;;  %s40_s1 = inlined_call_operand.vmem [shape: f32[8], index: 1, kind: output, shape index: {}]  }
   0x1   :  { %v4_v0 = vld [vmem:[%s39_s0] sm:$0x3]  ;;  %s22_s0 = smov 4  }
   0x2   :  { %5 = vst [vmem:[#allocation1] sm:$0x3] %v4_v0 }
   0x9   :  { %v10_v1 = vld [vmem:[#allocation1 + $0x1] sm:$0x1]   ;;  %v6_v2 = vld [vmem:[#allocation1] sm:$0x1]  }
   0xa   :  { %11 = vrot.lane.b32.xlu0 %v10_v1, %s22_s0  ;;  %8 = vst.msk [vmem:[#allocation0] sm:$0x1] %vm7_vm0, %v6_v2  }
  0x7c   :  { %v12_v3 = vpop.permute.xlu0 %11  }
  0x7d   :  { %14 = vst.msk [vmem:[#allocation0] sm:$0x1] %vm13_vm1, %v12_v3  }
  0x84   :  { %v18_v4 = vld [vmem:[#allocation0] sm:$0x1] }
  0x85   :  { %20 = vst [vmem:[%s40_s1] sm:$0x1] %v18_v4 }

// kernel: forward_model.1
= control target key start
LH: loop header
LB: loop body
LE: loop exit
PB: predicated region body
PF: predicated region fallthrough
CT: control target
= control target key end

     0   :  { %v1558_v3 = vmov 0.0|0.0   ;;  %vm1559_vm0 = vmmov 0   ;;  %v1560_v6 = vmov 0.0   ;;  %vm57_vm1 = vcmask 1043456   ;;  %s1963_s0 = inlined_call_operand.vmem [shape: f32[4,128], index: 0, kind: input, shape index: {}]   ;;  %s1964_s1 = inlined_call_operand.vmem [shape: f32[4,4], index: 1, kind: input, shape index: {}]   ;;  %s1965_s2 = inlined_call_operand.vmem [shape: f32[16,128], index: 2, kind: input, shape index: {}]   ;;  %s1966_s3 = inlined_call_operand.vmem [shape: f32[256,128], index: 3, kind: input, shape index: {}]   ;;  %s1967_s4 = inlined_call_operand.vmem [shape: f32[256,128], index: 4, kind: input, shape index: {}]   ;;  %s1968_s5 = inlined_call_operand.hbm [shape: f32[4,128], index: 5, kind: output, shape index: {}]  }
   0x1   :  { %v25_v0 = vld [vmem:[%s1966_s3] sm:$0xff]  ;;  %v26_v1 = vld [vmem:[%s1966_s3 + $0x8] sm:$0xff]  ;;  %v27_v2 = vld [vmem:[%s1966_s3 + $0x10] sm:$0xff]  ;;  %1381 = vmatprep.subr.bf16.mxu0 %v1558_v3  ;;  %1405 = vmatprep.subr.bf16.mxu1 %v1558_v3 }
   0x2   :  { %v1382_v4 = vpack.c.bf16 %v26_v1, %v25_v0  ;;  %v28_v5 = vld [vmem:[%s1966_s3 + $0x18] sm:$0xff]  ;;  %1207 = vmatprep.mubr.msk.f32.mxu0 %vm1559_vm0, %v1560_v6  ;;  %1242 = vmatprep.mubr.msk.f32.mxu1 %vm1559_vm0, %v1560_v6  ;;  %v29_v8 = vld [vmem:[%s1966_s3 + $0x20] sm:$0xff]  ;;  %v30_v9 = vld [vmem:[%s1966_s3 + $0x28] sm:$0xff] }
   0x3   :  { %v1385_v7 = vpack.c.bf16 %v28_v5, %v27_v2  ;;  %v1635_v10 = vld [vmem:[%s1963_s0] sm:$0xf] }
   0x4   :  { %1383 = vmatpush3.bf16.msra.mxu0 %v1382_v4  ;;  %1407 = vmatpush3.bf16.msra.mxu1 %v1382_v4 }
   0x5   :  { %1384 = vmatprep.subr.bf16.mxu0 %v1558_v3  ;;  %1408 = vmatprep.subr.bf16.mxu1 %v1558_v3 }
   0x6   :  { %10 = vsyncpa [#allocation3], 0  ;;  %v58_v11 = vsel %vm57_vm1, %v1635_v10, 0.0  ;;  %v67_v12 = vmul.f32 %v1635_v10, %v1635_v10  ;;  %v1388_v13 = vpack.c.bf16 %v30_v9, %v29_v8  ;;  %v31_v15 = vld [vmem:[%s1966_s3 + $0x30] sm:$0xff]  ;;  %v32_v16 = vld [vmem:[%s1966_s3 + $0x38] sm:$0xff]  ;;  %s1562_s14 = smov 120  }
   0x7   :  { %v59_v14 = vrot.slane %v58_v11, 4  ;;  %v1391_v20 = vpack.c.bf16 %v32_v16, %v31_v15  ;;  %v33_v22 = vld [vmem:[%s1966_s3 + $0x40] sm:$0xff]  ;;  %v34_v23 = vld [vmem:[%s1966_s3 + $0x48] sm:$0xff]  ;;  %v35_v27 = vld [vmem:[%s1966_s3 + $0x50] sm:$0xff]  ;;  %s1563_s15 = smov 96   ;;  %s1564_s16 = smov 112  }
   0x8   :  { %1386 = vmatpush3.bf16.msra.mxu0 %v1385_v7  ;;  %1410 = vmatpush3.bf16.msra.mxu1 %v1385_v7  ;;  %v68_v17 = vsel %vm57_vm1, %v67_v12, 0.0  ;;  %v1394_v26 = vpack.c.bf16 %v34_v23, %v33_v22  ;;  %v36_v28 = vld [vmem:[%s1966_s3 + $0x58] sm:$0xff]  ;;  %v37_v32 = vld [vmem:[%s1966_s3 + $0x60] sm:$0xff]  ;;  %v38_v33 = vld [vmem:[%s1966_s3 + $0x68] sm:$0xff]  ;;  %s1565_s17 = smov 124   ;;  %s1566_s18 = smov 88  }
   0x9   :  { %1387 = vmatprep.subr.bf16.mxu0 %v1558_v3  ;;  %1411 = vmatprep.subr.bf16.mxu1 %v1558_v3  ;;  %v69_v18 = vrot.slane %v68_v17, 4  ;;  %v60_v19 = vadd.f32 %v59_v14, %v58_v11  ;;  %v1397_v31 = vpack.c.bf16 %v36_v28, %v35_v27  ;;  %v1400_v36 = vpack.c.bf16 %v38_v33, %v37_v32  ;;  %v39_v37 = vld [vmem:[%s1966_s3 + $0x70] sm:$0xff]  ;;  %v40_v38 = vld [vmem:[%s1966_s3 + $0x78] sm:$0xff]  ;;  %v237_v44 = vld [vmem:[%s1967_s4] sm:$0xff]  ;;  %s1567_s19 = smov 108   ;;  %s1568_s20 = smov 116  }
   0xa   :  { %v1403_v41 = vpack.c.bf16 %v40_v38, %v39_v37  ;;  %v238_v45 = vld [vmem:[%s1967_s4 + $0x8] sm:$0xff]  ;;  %v239_v47 = vld [vmem:[%s1967_s4 + $0x10] sm:$0xff]  ;;  %v240_v48 = vld [vmem:[%s1967_s4 + $0x18] sm:$0xff]  ;;  %s1569_s21 = smov 100   ;;  %s1570_s28 = smov 60   ;;  %vm543_vm2 = vcmask 31744  }
   0xb   :  { %v70_v21 = vadd.f32 %v69_v18, %v68_v17  ;;  %v61_v24 = vrot.slane %v60_v19, 2  ;;  %v253_v46 = vpack.c.bf16 %v238_v45, %v237_v44  ;;  %v254_v49 = vpack.c.bf16 %v240_v48, %v239_v47  ;;  %v241_v50 = vld [vmem:[%s1967_s4 + $0x20] sm:$0xff]  ;;  %v242_v51 = vld [vmem:[%s1967_s4 + $0x28] sm:$0xff]  ;;  %v243_v53 = vld [vmem:[%s1967_s4 + $0x30] sm:$0xff]  ;;  %s1571_s29 = smov 36   ;;  %s1572_s30 = smov 24  }
   0xc   :  { %1389 = vmatpush3.bf16.msra.mxu0 %v1388_v13  ;;  %1413 = vmatpush3.bf16.msra.mxu1 %v1388_v13  ;;  %v255_v52 = vpack.c.bf16 %v242_v51, %v241_v50  ;;  %v244_v54 = vld [vmem:[%s1967_s4 + $0x38] sm:$0xff]  ;;  %v245_v56 = vld [vmem:[%s1967_s4 + $0x40] sm:$0xff]  ;;  %v246_v57 = vld [vmem:[%s1967_s4 + $0x48] sm:$0xff]  ;;  %vm545_vm3 = vcmask 97280   ;;  %vm547_vm4 = vcmask 162816   ;;  %vm559_vm5 = vcmask 195584  }
   0xd   :  { %1390 = vmatprep.subr.bf16.mxu0 %v1558_v3  ;;  %1414 = vmatprep.subr.bf16.mxu1 %v1558_v3  ;;  %v71_v25 = vrot.slane %v70_v21, 2  ;;  %v62_v29 = vadd.f32 %v61_v24, %v60_v19  ;;  %v256_v55 = vpack.c.bf16 %v244_v54, %v243_v53  ;;  %v257_v58 = vpack.c.bf16 %v246_v57, %v245_v56  ;;  %v247_v59 = vld [vmem:[%s1967_s4 + $0x50] sm:$0xff]  ;;  %v248_v60 = vld [vmem:[%s1967_s4 + $0x58] sm:$0xff]  ;;  %v249_v61 = vld [vmem:[%s1967_s4 + $0x60] sm:$0xff]  ;;  %s1573_s11 = smov 4  }
   0xe   :  { %v258_v62 = vpack.c.bf16 %v248_v60, %v247_v59  ;;  %v250_v63 = vld [vmem:[%s1967_s4 + $0x68] sm:$0xff]  ;;  %v251_v1 = vld [vmem:[%s1967_s4 + $0x70] sm:$0xff]  ;;  %v252_v2 = vld [vmem:[%s1967_s4 + $0x78] sm:$0xff]  ;;  %v227_v24 = vlaneseq  ;;  %vm770_vm6 = vcmask 1041408   ;;  %vm1574_vm7 = vmmov 1  }
   0xf   :  { %v72_v30 = vadd.f32 %v71_v25, %v70_v21  ;;  %v63_v34 = vrot.slane %v62_v29, 1  ;;  %v259_v0 = vpack.c.bf16 %v250_v63, %v249_v61  ;;  %v260_v4 = vpack.c.bf16 %v252_v2, %v251_v1  ;;  %v41_v5 = vld [vmem:[%s1966_s3 + $0x80] sm:$0xff]  ;;  %v42_v7 = vld [vmem:[%s1966_s3 + $0x88] sm:$0xff]  ;;  %v43_v9 = vld [vmem:[%s1966_s3 + $0x90] sm:$0xff] }
  0x10   :  { %1392 = vmatpush3.bf16.msra.mxu0 %v1391_v20  ;;  %1416 = vmatpush3.bf16.msra.mxu1 %v1391_v20  ;;  %v1430_v8 = vpack.c.bf16 %v42_v7, %v41_v5  ;;  %v44_v11 = vld [vmem:[%s1966_s3 + $0x98] sm:$0xff]  ;;  %v45_v13 = vld [vmem:[%s1966_s3 + $0xa0] sm:$0xff]  ;;  %v46_v14 = vld [vmem:[%s1966_s3 + $0xa8] sm:$0xff]  ;;  %v1767_v25 = vshrl.u32 %v227_v24, 7  ;;  %vm721_vm9 = vcmask 76800   ;;  %vm766_vm10 = vcmask 80896  }
  0x11   :  { %1393 = vmatprep.subr.bf16.mxu0 %v1558_v3  ;;  %1417 = vmatprep.subr.bf16.mxu1 %v1558_v3  ;;  %v73_v35 = vrot.slane %v72_v30, 1  ;;  %v64_v39 = vadd.f32 %v63_v34, %v62_v29  ;;  %v1433_v12 = vpack.c.bf16 %v44_v11, %v43_v9  ;;  %v1436_v15 = vpack.c.bf16 %v46_v14, %v45_v13  ;;  %v51_v44 = vld [vmem:[%s1966_s3 + $0xd0] sm:$0xff]  ;;  %v52_v45 = vld [vmem:[%s1966_s3 + $0xd8] sm:$0xff]  ;;  %v53_v47 = vld [vmem:[%s1966_s3 + $0xe0] sm:$0xff] }
  0x12   :  { %v229_v29 = vsub.s32 0, %v1767_v25  ;;  %v234_v33 = vsub.s32 1, %v1767_v25  ;;  %v54_v48 = vld [vmem:[%s1966_s3 + $0xe8] sm:$0xff]  ;;  %v55_v50 = vld [vmem:[%s1966_s3 + $0xf0] sm:$0xff]  ;;  %v56_v51 = vld [vmem:[%s1966_s3 + $0xf8] sm:$0xff]  ;;  %v264_v53 = vsub.s32 2, %v1767_v25 }
  0x13   :  { %v74_v40 = vadd.f32 %v73_v35, %v72_v30  ;;  %v66_v42 = vmul.f32 0.25, %v64_v39  ;;  %v48_v39 = vld [vmem:[%s1966_s3 + $0xb8] sm:$0xff]  ;;  %vm1482_vm8 = vmpackc.low %vm770_vm6, %vm1574_vm7  ;;  %vm853_vm11 = vcmask 261120   ;;  %vm927_vm12 = vcmask 257024  }
  0x14   :  { %1395 = vmatpush3.bf16.msra.mxu0 %v1394_v26  ;;  %1419 = vmatpush3.bf16.msra.mxu1 %v1394_v26  ;;  %v1772_v26 = vld [vmem:[%s1965_s2] sm:$0xff] }
  0x15   :  { %1396 = vmatprep.subr.bf16.mxu0 %v1558_v3  ;;  %1420 = vmatprep.subr.bf16.mxu1 %v1558_v3  ;;  %v75_v43 = vmul.f32 0.25, %v74_v40  ;;  %v265_v54 = vrot.slane %v1772_v26, %v264_v53 }
  0x18   :  { %1398 = vmatpush3.bf16.msra.mxu0 %v1397_v31  ;;  %1422 = vmatpush3.bf16.msra.mxu1 %v1397_v31 }
  0x19   :  { %1399 = vmatprep.subr.bf16.mxu0 %v1558_v3  ;;  %1423 = vmatprep.subr.bf16.mxu1 %v1558_v3 }
  0x1c   :  { %1401 = vmatpush3.bf16.msra.mxu0 %v1400_v36  ;;  %1425 = vmatpush3.bf16.msra.mxu1 %v1400_v36 }
  0x1d   :  { %1402 = vmatprep.subr.bf16.mxu0 %v1558_v3  ;;  %1426 = vmatprep.subr.bf16.mxu1 %v1558_v3 }
  0x20   :  { %1404 = vmatpush3.bf16.msra.mxu0 %v1403_v41  ;;  %1428 = vmatpush3.bf16.msra.mxu1 %v1403_v41  ;;  %v49_v41 = vld [vmem:[%s1966_s3 + $0xc0] sm:$0xff] }
  0x21   :  { %1245 = vmatprep.subr.bf16.mxu0 %v1560_v6  ;;  %1429 = vmatprep.subr.bf16.mxu1 %v1558_v3 }
  0x23   :  { %1208 = vmatmul.mubr.f32.vlgmr.msra.gmra.mrb[0].mxu0 %v66_v42  ;;  %1243 = vmatmul.mubr.f32.vlgmr.msra.gmra.mrb[0].mxu1 %v75_v43  ;;  %v50_v42 = vld [vmem:[%s1966_s3 + $0xc8] sm:$0xff] }
  0x24   :  { %1261 = vmatprep.mubr.msk.bf16.mxu0 %vm1559_vm0, %v1560_v6  ;;  %1297 = vmatprep.mubr.msk.f32.mxu1 %vm1559_vm0, %v1560_v6  ;;  %v1442_v43 = vpack.c.bf16 %v50_v42, %v49_v41  ;;  %v549_v41 = vld [vmem:[%s1967_s4 + $0x80] sm:$0xff]  ;;  %v550_v42 = vld [vmem:[%s1967_s4 + $0x88] sm:$0xff] }
  0x25   :  { %1246 = vmatpush3.bf16.msra.mxu0 %v253_v46  ;;  %1431 = vmatpush3.bf16.msra.mxu1 %v1430_v8  ;;  %v1445_v46 = vpack.c.bf16 %v52_v45, %v51_v44 }
  0x26   :  { %1247 = vmatprep.subr.bf16.mxu0 %v1560_v6  ;;  %1432 = vmatprep.subr.bf16.mxu1 %v1558_v3 }
  0x29   :  { %1248 = vmatpush3.bf16.msra.mxu0 %v254_v49  ;;  %1434 = vmatpush3.bf16.msra.mxu1 %v1433_v12  ;;  %v1448_v49 = vpack.c.bf16 %v54_v48, %v53_v47 }
  0x2a   :  { %1249 = vmatprep.subr.bf16.mxu0 %v1560_v6  ;;  %1435 = vmatprep.subr.bf16.mxu1 %v1558_v3 }
  0x2d   :  { %1250 = vmatpush3.bf16.msra.mxu0 %v255_v52  ;;  %1437 = vmatpush3.bf16.msra.mxu1 %v1436_v15  ;;  %v1451_v52 = vpack.c.bf16 %v56_v51, %v55_v50 }
  0x2e   :  { %1251 = vmatprep.subr.bf16.mxu0 %v1560_v6  ;;  %1438 = vmatprep.subr.bf16.mxu1 %v1558_v3 }
  0x31   :  { %1252 = vmatpush3.bf16.msra.mxu0 %v256_v55 }
  0x32   :  { %1253 = vmatprep.subr.bf16.mxu0 %v1560_v6 }
  0x35   :  { %1254 = vmatpush3.bf16.msra.mxu0 %v257_v58 }
  0x36   :  { %1255 = vmatprep.subr.bf16.mxu0 %v1560_v6 }
  0x39   :  { %1256 = vmatpush3.bf16.msra.mxu0 %v258_v62 }
  0x3a   :  { %1257 = vmatprep.subr.bf16.mxu0 %v1560_v6 }
  0x3d   :  { %1258 = vmatpush3.bf16.msra.mxu0 %v259_v0 }
  0x3e   :  { %1259 = vmatprep.subr.bf16.mxu0 %v1560_v6 }
  0x41   :  { %1260 = vmatpush3.bf16.msra.mxu0 %v260_v4 }
  0x42   :  { %1453 = vmatprep.subr.bf16.mxu0 %v1558_v3 }
  0xf6   :  { %v142_v16 = vpop.f32.mrb[0].mxu0  ;;  %v212_v17 = vpop.f32.mrb[0].mxu1 }
  0xf7   :  { %v216_v18 = vmul.f32 %v142_v16, %v142_v16  ;;  %v1209_v19 = vpop.f32.mrb[1].mxu0  ;;  %v1244_v20 = vpop.f32.mrb[1].mxu1 }
  0xf9   :  { %v217_v21 = vsub.f32 %v212_v17, %v216_v18 }
  0xfb   :  { %v218_v22 = vmax.f32 %v217_v21, 0.0 }
  0xfd   :  { %v219_v23 = vadd.f32 1e-05, %v218_v22 }
  0xff   :  { %1514 = vrsqrt.f32 %v219_v23 }
 0x109   :  { %v1515_v27 = vpop.eup %1514 }
 0x10a   :  { %v221_v28 = vmul.f32 %v1515_v27, %v1772_v26 }
 0x10c   :  { %v222_v30 = vmul.f32 %v221_v28, %v142_v16  ;;  %v230_v32 = vrot.slane %v221_v28, %v229_v29 }
 0x10e   :  { %v224_v31 = vrot.slane %v222_v30, 7  ;;  %v231_v35 = vmul.f32 %v230_v32, %v1635_v10  ;;  %v47_v10 = vld [vmem:[%s1966_s3 + $0xb0] sm:$0xff]  ;;  %v483_v32 = vsub.s32 3, %v1767_v25  ;;  %s1561_s3 = smov 104  }
 0x10f   :  { %v1439_v40 = vpack.c.bf16 %v48_v39, %v47_v10 }
 0x110   :  { %v226_v34 = vsub.f32 %v1772_v26, %v224_v31 }
 0x111   :  { %1440 = vmatpush3.bf16.msra.mxu1 %v1439_v40 }
 0x112   :  { %v235_v36 = vrot.slane %v226_v34, %v234_v33  ;;  %1441 = vmatprep.subr.bf16.mxu1 %v1558_v3 }
 0x114   :  { %v236_v37 = vadd.f32 %v235_v36, %v231_v35 }
 0x115   :  { %1443 = vmatpush3.bf16.msra.mxu1 %v1442_v43 }
 0x116   :  { %v261_v38 = vpack.c.bf16 %v236_v37, %v236_v37  ;;  %1444 = vmatprep.subr.bf16.mxu1 %v1558_v3  ;;  %v488_v37 = vsub.s32 4, %v1767_v25 }
 0x118   :  { %1262 = vmatmul.mubr.bf16.vlgmr.msra.gmra.mrb[4].mxu0 %v261_v38 }
 0x119   :  { %1455 = vmatpush3.bf16.msra.mxu0 %v1430_v8  ;;  %1332 = vmatprep.mubr.msk.f32.mxu0 %vm1559_vm0, %v1560_v6 }
 0x11a   :  { %1456 = vmatprep.subr.bf16.mxu0 %v1558_v3  ;;  %1446 = vmatpush3.bf16.msra.mxu1 %v1445_v46 }
 0x11b   :  { %1447 = vmatprep.subr.bf16.mxu1 %v1558_v3 }
 0x11d   :  { %1458 = vmatpush3.bf16.msra.mxu0 %v1433_v12 }
 0x11e   :  { %1459 = vmatprep.subr.bf16.mxu0 %v1558_v3  ;;  %1449 = vmatpush3.bf16.msra.mxu1 %v1448_v49 }
 0x11f   :  { %1450 = vmatprep.subr.bf16.mxu1 %v1558_v3 }
 0x121   :  { %1461 = vmatpush3.bf16.msra.mxu0 %v1436_v15 }
 0x122   :  { %1462 = vmatprep.subr.bf16.mxu0 %v1558_v3  ;;  %1452 = vmatpush3.bf16.msra.mxu1 %v1451_v52 }
 0x123   :  { %1335 = vmatprep.subr.bf16.mxu1 %v1560_v6 }
 0x125   :  { %1464 = vmatpush3.bf16.msra.mxu0 %v1439_v40 }
 0x126   :  { %1465 = vmatprep.subr.bf16.mxu0 %v1558_v3 }
 0x129   :  { %1467 = vmatpush3.bf16.msra.mxu0 %v1442_v43  ;;  %v552_v43 = vpack.c.bf16 %v550_v42, %v549_v41 }
 0x12a   :  { %1468 = vmatprep.subr.bf16.mxu0 %v1558_v3 }
 0x12d   :  { %1470 = vmatpush3.bf16.msra.mxu0 %v1445_v46  ;;  %v551_v46 = vld [vmem:[%s1967_s4 + $0x90] sm:$0xff] }
 0x12e   :  { %1471 = vmatprep.subr.bf16.mxu0 %v1558_v3  ;;  %v553_v47 = vpack.c.bf16 %v551_v46, %v551_v46 }
 0x131   :  { %1473 = vmatpush3.bf16.msra.mxu0 %v1448_v49  ;;  %v564_v49 = vsel %vm57_vm1, %v553_v47, 0 }
 0x132   :  { %1474 = vmatprep.subr.bf16.mxu0 %v1558_v3 }
 0x135   :  { %1476 = vmatpush3.bf16.msra.mxu0 %v1451_v52 }
 0x1eb   :  { %v300_v55 = vpop.f32.mrb[4].mxu0 }
 0x1ec   :  { %v301_v56 = vadd.f32 %v300_v55, %v265_v54  ;;  %v1263_v57 = vpop.f32.mrb[5].mxu0 }
 0x1ed   :  { %v303_v58 = vpop.f32.mrb[6].mxu0 }
 0x1ee   :  { %v306_v59 = vmax.f32 %v301_v56, 0.0  ;;  %v1264_v60 = vpop.f32.mrb[7].mxu0 }
 0x1f0   :  { %v307_v61 = vsel %vm57_vm1, %v306_v59, 0.0  ;;  %v315_v62 = vmul.f32 %v306_v59, %v306_v59 }
 0x1f1   :  { %v308_v63 = vrot.slane %v307_v61, 4 }
 0x1f2   :  { %v316_v0 = vsel %vm57_vm1, %v315_v62, 0.0 }
 0x1f3   :  { %v309_v1 = vadd.f32 %v308_v63, %v307_v61  ;;  %v317_v2 = vrot.slane %v316_v0, 4 }
 0x1f5   :  { %v310_v4 = vrot.slane %v309_v1, 2  ;;  %v318_v5 = vadd.f32 %v317_v2, %v316_v0 }
 0x1f7   :  { %v311_v7 = vadd.f32 %v310_v4, %v309_v1  ;;  %v319_v8 = vrot.slane %v318_v5, 2 }
 0x1f9   :  { %v312_v9 = vrot.slane %v311_v7, 1  ;;  %v320_v11 = vadd.f32 %v319_v8, %v318_v5 }
 0x1fb   :  { %v313_v12 = vadd.f32 %v312_v9, %v311_v7  ;;  %v321_v13 = vrot.slane %v320_v11, 1 }
 0x1fd   :  { %v314_v14 = vmul.f32 0.25, %v313_v12  ;;  %v322_v15 = vadd.f32 %v321_v13, %v320_v11 }
 0x1ff   :  { %1298 = vmatmul.mubr.f32.vlgmr.msra.gmra.mrb[2].mxu1 %v314_v14  ;;  %v323_v16 = vmul.f32 0.25, %v322_v15  ;;  %v629_v15 = vld [vmem:[%s1967_s4 + $0x98] sm:$0xff] }
 0x200   :  { %1339 = vmatprep.mubr.msk.bf16.mxu1 %vm1559_vm0, %v1560_v6  ;;  %1336 = vmatpush3.bf16.msra.mxu1 %v552_v43  ;;  %v634_v43 = vsub.s32 6, %v1767_v25 }
 0x201   :  { %1333 = vmatmul.mubr.f32.vlgmr.msra.gmra.mrb[2].mxu0 %v323_v16  ;;  %1337 = vmatprep.subr.bf16.mxu1 %v1560_v6  ;;  %v630_v16 = vld [vmem:[%s1967_s4 + $0xa0] sm:$0xff] }
 0x204   :  { %1338 = vmatpush3.bf16.msra.mxu1 %v564_v49 }
 0x205   :  { %1477 = vmatprep.subr.bf16.mxu1 %v1558_v3 }
 0x2d2   :  { %v390_v17 = vpop.f32.mrb[2].mxu1 }
 0x2d3   :  { %v464_v18 = vmul.f32 %v390_v17, %v390_v17  ;;  %v1299_v19 = vpop.f32.mrb[3].mxu1 }
 0x2d4   :  { %v460_v20 = vpop.f32.mrb[2].mxu0 }
 0x2d5   :  { %v465_v21 = vsub.f32 %v460_v20, %v464_v18  ;;  %v1334_v22 = vpop.f32.mrb[3].mxu0  ;;  %v557_v18 = vsub.s32 5, %v1767_v25 }
 0x2d7   :  { %v466_v23 = vmax.f32 %v465_v21, 0.0  ;;  %v558_v19 = vrot.slane %v1772_v26, %v557_v18 }
 0x2d9   :  { %v467_v24 = vadd.f32 1e-05, %v466_v23 }
 0x2db   :  { %1516 = vrsqrt.f32 %v467_v24 }
 0x2e5   :  { %v1517_v27 = vpop.eup %1516 }
 0x2e6   :  { %v470_v28 = vrot.slane %v1517_v27, 5 }
 0x2e8   :  { %v472_v30 = vmul.f32 %v470_v28, %v1772_v26 }
 0x2ea   :  { %v474_v31 = vrot.slane %v472_v30, 3  ;;  %v484_v36 = vrot.slane %v472_v30, %v483_v32 }
 0x2ec   :  { %v476_v34 = vmul.f32 %v474_v31, %v390_v17  ;;  %v485_v10 = vmul.f32 %v484_v36, %v306_v59  ;;  %v1478_v17 = vpack.c.bf16 %v630_v16, %v629_v15  ;;  %v631_v31 = vld [vmem:[%s1967_s4 + $0xa8] sm:$0xff] }
 0x2ee   :  { %v478_v35 = vrot.slane %v476_v34, 4 }
 0x2f0   :  { %v480_v38 = vsub.f32 %v1772_v26, %v478_v35 }
 0x2f2   :  { %v489_v39 = vrot.slane %v480_v38, %v488_v37 }
 0x2f4   :  { %v490_v40 = vadd.f32 %v489_v39, %v485_v10 }
 0x2f6   :  { %512 = vrot.lane.b32.xlu1 %v490_v40, %s1561_s3  ;;  %496 = vrot.lane.b32.xlu0 %v490_v40, %s1562_s14 }
 0x2fa   :  { %523 = vrot.lane.b32.xlu1 %v490_v40, %s1563_s15  ;;  %504 = vrot.lane.b32.xlu0 %v490_v40, %s1564_s16 }
 0x2fe   :  { %492 = vrot.lane.b32.xlu1 %v490_v40, %s1565_s17  ;;  %527 = vrot.lane.b32.xlu0 %v490_v40, %s1566_s18 }
 0x302   :  { %508 = vrot.lane.b32.xlu1 %v490_v40, %s1567_s19  ;;  %500 = vrot.lane.b32.xlu0 %v490_v40, %s1568_s20 }
 0x306   :  { %516 = vrot.lane.b32.xlu0 %v490_v40, %s1569_s21 }
 0x368   :  { %v513_v44 = vpop.permute.xlu1 %512  ;;  %v497_v45 = vpop.permute.xlu0 %496 }
 0x369   :  { %v520_v48 = vmax.f32 %v490_v40, %v497_v45 }
 0x36c   :  { %v524_v50 = vpop.permute.xlu1 %523  ;;  %v505_v51 = vpop.permute.xlu0 %504 }
 0x36d   :  { %v521_v52 = vmax.f32 %v520_v48, %v505_v51 }
 0x36f   :  { %v522_v54 = vmax.f32 %v521_v52, %v513_v44  ;;  %v760_v52 = vld [vmem:[%s1967_s4 + $0xb0] sm:$0xff] }
 0x370   :  { %v493_v55 = vpop.permute.xlu1 %492  ;;  %v528_v56 = vpop.permute.xlu0 %527 }
 0x371   :  { %v495_v57 = vmax.f32 %v490_v40, %v493_v55  ;;  %v526_v58 = vmax.f32 %v522_v54, %v524_v50  ;;  %536 = vrot.lane.b32.xlu0 %v522_v54, %s1570_s28  ;;  %v761_v54 = vld [vmem:[%s1967_s4 + $0xb8] sm:$0x3] }
 0x372   :  { %v1481_v55 = vpack.c.bf16 %v761_v54, %v760_v52 }
 0x373   :  { %v530_v59 = vmax.f32 %v526_v58, %v528_v56  ;;  %v499_v60 = vmax.f32 %v495_v57, %v497_v45  ;;  %v715_v56 = vld [vmem:[%s1964_s1] sm:$0xf] }
 0x374   :  { %v501_v61 = vpop.permute.xlu0 %500  ;;  %v509_v0 = vpop.permute.xlu1 %508 }
 0x375   :  { %v503_v62 = vmax.f32 %v499_v60, %v501_v61  ;;  %532 = vrot.lane.b32.xlu1 %v530_v59, %s1569_s21 }
 0x377   :  { %v507_v63 = vmax.f32 %v503_v62, %v505_v51 }
 0x378   :  { %v517_v4 = vpop.permute.xlu0 %516 }
 0x379   :  { %v511_v1 = vmax.f32 %v507_v63, %v509_v0  ;;  %540 = vrot.lane.b32.xlu1 %v495_v57, %s1571_s29 }
 0x37b   :  { %v515_v2 = vmax.f32 %v511_v1, %v513_v44  ;;  %v635_v44 = vrot.slane %v1772_v26, %v634_v43 }
 0x37d   :  { %v519_v5 = vmax.f32 %v515_v2, %v517_v4 }
 0x3e3   :  { %v537_v9 = vpop.permute.xlu0 %536 }
 0x3e7   :  { %v533_v7 = vpop.permute.xlu1 %532 }
 0x3e8   :  { %v544_v8 = vsel %vm543_vm2, %v519_v5, %v533_v7 }
 0x3e9   :  { %v546_v12 = vsel %vm545_vm3, %v544_v8, %v537_v9 }
 0x3eb   :  { %v541_v11 = vpop.permute.xlu1 %540 }
 0x3ec   :  { %v548_v13 = vsel %vm547_vm4, %v546_v12, %v541_v11 }
 0x3ed   :  { %620 = vrot.lane.b32.xlu0 %v548_v13, %s1572_s30  ;;  %v554_v14 = vpack.c.bf16 %v548_v13, %v548_v13 }
 0x3ef   :  { %1340 = vmatmul.mubr.msk.bf16.vlgmr.msra.gmra.mrb[4].mxu1 %vm559_vm5, %v554_v14 }
 0x3f0   :  { %1349 = vmatprep.mubr.msk.f32.mxu1 %vm1559_vm0, %v1560_v6  ;;  %1479 = vmatpush3.bf16.msra.mxu1 %v1478_v17 }
 0x3f1   :  { %1347 = vmatprep.subr.mxu1 %v1560_v6 }
 0x3f4   :  { %1348 = vmatpush3.msra.mxu1 %v631_v31  ;;  %v845_v31 = vld [vmem:[%s1967_s4 + $0xc0] sm:$0xff] }
 0x3f5   :  { %1480 = vmatprep.subr.bf16.mxu1 %v1558_v3 }
 0x45f   :  { %v621_v36 = vpop.permute.xlu0 %620 }
 0x4c2   :  { %v600_v20 = vpop.f32.mrb[4].mxu1 }
 0x4c3   :  { %v601_v21 = vadd.f32 %v600_v20, %v558_v19  ;;  %v1341_v22 = vpop.f32.mrb[5].mxu1 }
 0x4c4   :  { %v603_v23 = vpop.f32.mrb[6].mxu1 }
 0x4c5   :  { %v1070_v24 = vmul.f32 -1.442695, %v601_v21  ;;  %v1342_v27 = vpop.f32.mrb[7].mxu1  ;;  %v606_v39 = vmax.f32 %v601_v21, 0.0  ;;  %v752_v21 = vsub.s32 7, %v1767_v25 }
 0x4c7   :  { %1518 = vpow2.f32 %v1070_v24  ;;  %v1898_v24 = vld [vmem:[%s1965_s2 + $0x8] sm:$0xff] }
 0x4d1   :  { %v1519_v28 = vpop.eup %1518 }
 0x4d2   :  { %v610_v30 = vadd.f32 1.0, %v1519_v28 }
 0x4d4   :  { %1520 = vrcp.f32 %v610_v30 }
 0x4de   :  { %v1521_v34 = vpop.eup %1520 }
 0x4df   :  { %614 = vrot.lane.b32.xlu1 %v1521_v34, %s1561_s3  ;;  %v618_v35 = vsub.f32 1.0, %v1521_v34  ;;  %v846_v34 = vld [vmem:[%s1967_s4 + $0xc8] sm:$0xff] }
 0x4e1   :  { %v623_v38 = vmul.f32 %v621_v36, %v618_v35  ;;  %v1485_v36 = vpack.c.bf16 %v846_v34, %v845_v31 }
 0x4e3   :  { %625 = vrot.lane.b32.xlu0 %v623_v38, %s1561_s3 }
 0x551   :  { %v615_v10 = vpop.permute.xlu1 %614 }
 0x552   :  { %v617_v40 = vmul.f32 %v615_v10, %v606_v39  ;;  %v847_v10 = vld [vmem:[%s1967_s4 + $0xd0] sm:$0xff]  ;;  %v848_v39 = vld [vmem:[%s1967_s4 + $0xd8] sm:$0xff] }
 0x555   :  { %v626_v41 = vpop.permute.xlu0 %625 }
 0x556   :  { %v628_v42 = vadd.f32 %v626_v41, %v617_v40  ;;  %v1488_v40 = vpack.c.bf16 %v848_v39, %v847_v10 }
 0x558   :  { %1350 = vmatmul.mubr.msk.f32.vlgmr.msra.gmra.mrb[8].mxu1 %vm559_vm5, %v628_v42 }
 0x559   :  { %1356 = vmatprep.mubr.msk.f32.mxu1 %vm1559_vm0, %v1560_v6  ;;  %1483 = vmatpush3.bf16.msk.msra.mxu1 %vm1482_vm8, %v1481_v55 }
 0x55a   :  { %1484 = vmatprep.subr.bf16.mxu1 %v1558_v3 }
 0x62b   :  { %v705_v45 = vpop.f32.mrb[8].mxu1 }
 0x62c   :  { %v706_v46 = vadd.f32 %v705_v45, %v635_v44  ;;  %v1351_v47 = vpop.f32.mrb[9].mxu1  ;;  %v967_v45 = vld [vmem:[%s1967_s4 + $0xe0] sm:$0xff] }
 0x62e   :  { %v1072_v48 = vmul.f32 -1.442695, %v706_v46  ;;  %v968_v46 = vld [vmem:[%s1967_s4 + $0xe8] sm:$0xff] }
 0x62f   :  { %v1491_v47 = vpack.c.bf16 %v968_v46, %v967_v45 }
 0x630   :  { %1522 = vpow2.f32 %v1072_v48 }
 0x63a   :  { %v1523_v49 = vpop.eup %1522 }
 0x63b   :  { %v712_v50 = vadd.f32 1.0, %v1523_v49  ;;  %v852_v49 = vrot.slane %v1898_v24, %v264_v53 }
 0x63d   :  { %1524 = vrcp.f32 %v712_v50 }
 0x647   :  { %v1525_v51 = vpop.eup %1524 }
 0x648   :  { %717 = vrot.lane.b32.xlu1 %v1525_v51, %s1573_s11 }
 0x6ba   :  { %v718_v57 = vpop.permute.xlu1 %717 }
 0x6bb   :  { %v720_v58 = vsel %vm543_vm2, %v715_v56, %v718_v57 }
 0x6bc   :  { %v722_v59 = vsel %vm721_vm9, %v720_v58, 0.0  ;;  %v730_v60 = vmul.f32 %v720_v58, %v720_v58 }
 0x6bd   :  { %v723_v61 = vrot.slane %v722_v59, 4 }
 0x6be   :  { %v731_v62 = vsel %vm721_vm9, %v730_v60, 0.0 }
 0x6bf   :  { %v724_v63 = vadd.f32 %v723_v61, %v722_v59  ;;  %v732_v0 = vrot.slane %v731_v62, 4 }
 0x6c1   :  { %v725_v1 = vrot.slane %v724_v63, 2  ;;  %v733_v2 = vadd.f32 %v732_v0, %v731_v62 }
 0x6c3   :  { %v726_v4 = vadd.f32 %v725_v1, %v724_v63  ;;  %v734_v5 = vrot.slane %v733_v2, 2 }
 0x6c5   :  { %v727_v7 = vrot.slane %v726_v4, 1  ;;  %v735_v8 = vadd.f32 %v734_v5, %v733_v2 }
 0x6c7   :  { %v728_v9 = vadd.f32 %v727_v7, %v726_v4  ;;  %v736_v11 = vrot.slane %v735_v8, 1 }
 0x6c9   :  { %v729_v12 = vmul.f32 0.25, %v728_v9  ;;  %v737_v13 = vadd.f32 %v736_v11, %v735_v8 }
 0x6cb   :  { %v738_v14 = vmul.f32 0.25, %v737_v13  ;;  %v739_v15 = vmul.f32 %v729_v12, %v729_v12 }
 0x6cd   :  { %v740_v16 = vsub.f32 %v738_v14, %v739_v15 }
 0x6cf   :  { %v741_v17 = vmax.f32 %v740_v16, 0.0 }
 0x6d1   :  { %v742_v19 = vadd.f32 1e-05, %v741_v17 }
 0x6d3   :  { %1526 = vrsqrt.f32 %v742_v19 }
 0x6dd   :  { %v1527_v20 = vpop.eup %1526 }
 0x6de   :  { %v744_v22 = vmul.f32 %v1527_v20, %v1772_v26 }
 0x6e0   :  { %v745_v23 = vmul.f32 %v744_v22, %v729_v12  ;;  %v753_v28 = vrot.slane %v744_v22, %v752_v21 }
 0x6e2   :  { %v747_v27 = vrot.slane %v745_v23, 7  ;;  %v754_v35 = vmul.f32 %v753_v28, %v720_v58  ;;  %v974_v23 = vrot.slane %v1898_v24, %v557_v18 }
 0x6e4   :  { %v749_v30 = vsub.f32 %v1898_v24, %v747_v27 }
 0x6e6   :  { %v758_v26 = vrot.slane %v749_v30, %v229_v29  ;;  %v765_v29 = vrot.slane %v1898_v24, %v234_v33  ;;  %v969_v33 = vld [vmem:[%s1967_s4 + $0xf0] sm:$0xff] }
 0x6e8   :  { %v759_v38 = vadd.f32 %v758_v26, %v754_v35 }
 0x6ea   :  { %1357 = vmatmul.mubr.msk.f32.vlgmr.msra.gmra.mrb[10].mxu1 %vm766_vm10, %v759_v38 }
 0x6eb   :  { %1486 = vmatpush3.bf16.msra.mxu1 %v1485_v36  ;;  %1367 = vmatprep.mubr.msk.f32.mxu1 %vm1559_vm0, %v1560_v6 }
 0x6ec   :  { %1487 = vmatprep.subr.bf16.mxu1 %v1558_v3 }
 0x6ef   :  { %1489 = vmatpush3.bf16.msra.mxu1 %v1488_v40 }
 0x6f0   :  { %1490 = vmatprep.subr.bf16.mxu1 %v1558_v3 }
 0x7bd   :  { %v840_v41 = vpop.f32.mrb[10].mxu1 }
 0x7be   :  { %v841_v42 = vadd.f32 %v840_v41, %v765_v29  ;;  %v1358_v43 = vpop.f32.mrb[11].mxu1 }
 0x7c0   :  { %v844_v44 = vmax.f32 %v841_v42, 0.0 }
 0x7c2   :  { %1368 = vmatmul.mubr.msk.f32.vlgmr.msra.gmra.mrb[12].mxu1 %vm853_vm11, %v844_v44 }
 0x7c3   :  { %1378 = vmatprep.mubr.msk.f32.mxu1 %vm1559_vm0, %v1560_v6  ;;  %1492 = vmatpush3.bf16.msra.mxu1 %v1491_v47  ;;  %v970_v6 = vld [vmem:[%s1967_s4 + $0xf8] sm:$0xff]  ;;  %s1575_s4 = smov [#allocation2]  }
 0x7c4   :  { %1493 = vmatprep.subr.bf16.mxu1 %v1558_v3  ;;  %v1494_v48 = vpack.c.bf16 %v970_v6, %v969_v33  ;;  %s1061_s8 = sshll.u32 %s1575_s4, 4  ;;  %s1062_s8 = int_to_ptr.vmem [resolvable:$true] %s1061_s8 }
 0x7c5   :  { %s1534_s0 = scalar_lea.vmem %s1062_s8, 64  ;;  %p1539_p1 = scmp.lt.s32.totalorder %s1062_s8, %s1062_s8 }
 0x7c6   :  { %p1535_p0 = scmp.ne.s32.totalorder %s1062_s8, %s1534_s0  ;;  %p1540_p2 = scmp.lt.s32.totalorder %s1534_s0, %s1534_s0 }
 0x7c7   :  { %1495 = vmatpush3.bf16.msra.mxu1 %v1494_v48 }
 0x7c8   :  { %p1541_p3 = por %p1540_p2, %p1539_p1 }
 0x7ca   :  { %p1542_p4 = pnand %p1541_p3, %p1535_p0 }
 0x895   :  { %v923_v50 = vpop.f32.mrb[12].mxu1 }
 0x896   :  { %v924_v51 = vadd.f32 %v923_v50, %v852_v49  ;;  %v1369_v52 = vpop.f32.mrb[13].mxu1 }
 0x898   :  { %v928_v54 = vsel %vm927_vm12, %v924_v51, 0.0  ;;  %v936_v3 = vmul.f32 %v924_v51, %v924_v51 }
 0x899   :  { %v929_v55 = vrot.slane %v928_v54, 4 }
 0x89a   :  { %v937_v56 = vsel %vm927_vm12, %v936_v3, 0.0 }
 0x89b   :  { %v930_v57 = vadd.f32 %v929_v55, %v928_v54  ;;  %v938_v58 = vrot.slane %v937_v56, 4 }
 0x89d   :  { %v931_v59 = vrot.slane %v930_v57, 2  ;;  %v939_v60 = vadd.f32 %v938_v58, %v937_v56 }
 0x89f   :  { %v932_v61 = vadd.f32 %v931_v59, %v930_v57  ;;  %v940_v62 = vrot.slane %v939_v60, 2 }
 0x8a1   :  { %v933_v63 = vrot.slane %v932_v61, 1  ;;  %v941_v0 = vadd.f32 %v940_v62, %v939_v60 }
 0x8a3   :  { %v934_v1 = vadd.f32 %v933_v63, %v932_v61  ;;  %v942_v2 = vrot.slane %v941_v0, 1 }
 0x8a5   :  { %v935_v4 = vmul.f32 0.25, %v934_v1  ;;  %v943_v53 = vadd.f32 %v942_v2, %v941_v0 }
 0x8a7   :  { %v944_v5 = vmul.f32 0.25, %v943_v53  ;;  %v945_v7 = vmul.f32 %v935_v4, %v935_v4 }
 0x8a9   :  { %v946_v8 = vsub.f32 %v944_v5, %v945_v7 }
 0x8ab   :  { %v947_v9 = vmax.f32 %v946_v8, 0.0 }
 0x8ad   :  { %v948_v11 = vadd.f32 1e-05, %v947_v9 }
 0x8af   :  { %1528 = vrsqrt.f32 %v948_v11 }
 0x8b9   :  { %v1529_v12 = vpop.eup %1528 }
 0x8ba   :  { %v950_v13 = vmul.f32 %v1529_v12, %v1898_v24 }
 0x8bc   :  { %v951_v14 = vmul.f32 %v950_v13, %v935_v4  ;;  %v959_v16 = vrot.slane %v950_v13, %v483_v32 }
 0x8be   :  { %v953_v15 = vrot.slane %v951_v14, 7  ;;  %v960_v19 = vmul.f32 %v959_v16, %v924_v51 }
 0x8c0   :  { %v955_v17 = vsub.f32 %v1898_v24, %v953_v15 }
 0x8c2   :  { %v964_v20 = vrot.slane %v955_v17, %v488_v37 }
 0x8c4   :  { %v965_v21 = vadd.f32 %v964_v20, %v960_v19 }
 0x8c6   :  { %v966_v22 = vmax.f32 %v965_v21, 0.0 }
 0x8c8   :  { %1379 = vmatmul.mubr.msk.f32.vlgmr.msra.gmra.mrb[14].mxu1 %vm853_vm11, %v966_v22 }
 0x99b   :  { %v1044_v27 = vpop.f32.mrb[14].mxu1 }
 0x99c   :  { %v1045_v28 = vadd.f32 %v1044_v27, %v974_v23  ;;  %v1380_v30 = vpop.f32.mrb[15].mxu1 }
 0x99e   :  { %v1077_v31 = vmul.f32 -1.442695, %v1045_v28 }
 0x9a0   :  { %1530 = vpow2.f32 %v1077_v31 }
 0x9aa   :  { %v1531_v32 = vpop.eup %1530 }
 0x9ab   :  { %v1051_v34 = vadd.f32 1.0, %v1531_v32 }
 0x9ad   :  { %1532 = vrcp.f32 %v1051_v34 }
 0x9b7   :  { %v1533_v37 = vpop.eup %1532 }
 0x9b8   :  { %1054 = vst [vmem:[#allocation2] sm:$0xf] %v1533_v37 }
 0x9b9   :  { %1545 = shalt.err (!%p1542_p4)
}
 0x9ba   :  { %s1546_s11 = scalar_lea.hbm %s1968_s5, 64 }
 0x9bb   :  { %p1547_p5 = scmp.ne.s32.totalorder %s1968_s5, %s1546_s11  ;;  %p1550_p6 = scmp.lt.u32.totalorder %s1546_s11, %s1968_s5 }
 0x9bd   :  { %p1552_p7 = pnand %p1550_p6, %p1547_p5 }
 0x9bf   :  { %1555 = shalt.err (!%p1552_p7)
}
 0x9c0   :  { %1064 = dma.vmem_to_hbm [thread:$0]  %s1062_s8, 64, %s1968_s5, [#allocation3]  }
 0x9c1   :  { %1556 = dma.done.wait [#allocation3], 64  }
 0x9c2   :  { %1557 = vsyncadd [#allocation3], 4294967232 }
 0x9c3   :  { %1068 = vsyncpa [#allocation3], 1 }

</bundles_post_ra>
